<compile_context>
chip_gen: v7x
topology: tpu7x:2x2x1
jax: 0.10.0
libtpu: 0.0.40
codegen_flags: <defaults>
</compile_context>

<pallas_src>
import jax
import jax.numpy as jnp
from jax.experimental import pallas as pl
from jax.experimental.pallas import tpu as pltpu

N_FEATURES = 32    # stand-in for timm backbone head.in_features
ATT_HIDDEN = 256   # att_pattern == 'A': Linear(F,256) -> Tanh -> Linear(256,1)
N_CLASSES = 3


def _model_kernel(x_ref, wpool_ref, bb_ref, w1_ref, b1_ref, w2_ref, b2_ref,
                  wh_ref, bh_ref, out_ref):
    # x_ref: (TB, C*H*W) bf16, lane-dense (C*H*W multiple of 128 here).
    x = x_ref[...].astype(jnp.float32)

    # Fused quadrant-GAP + backbone projection: one MXU pass, K=C*H*W,
    # N=4*F=128 -> lane-dense 128-wide result.
    h_all = jnp.dot(x, wpool_ref[...],
                    preferred_element_type=jnp.float32) + bb_ref[...]      # (TB, 4F)

    # Attention MLP on all 4 quadrants at once (block-diagonal weights):
    # Linear(F,256) -> Tanh -> Linear(256,1) per quadrant.
    z = jnp.tanh(jnp.dot(h_all, w1_ref[...],
                         preferred_element_type=jnp.float32) + b1_ref[...])  # (TB, 4A)
    s = jnp.dot(z, w2_ref[...],
                preferred_element_type=jnp.float32) + b2_ref[...]            # (TB, 4)

    # Softmax over the 4 quadrant scores (exact division; ~free on the EUP).
    m = jnp.max(s, axis=-1, keepdims=True)
    e = jnp.exp(s - m)
    w = e / jnp.sum(e, axis=-1, keepdims=True)                               # (TB, 4)

    # Classification head applied per quadrant BEFORE fusion (exact by
    # linearity): avoids slicing 32-lane chunks out of the fused h_all.
    o = jnp.dot(h_all, wh_ref[...], preferred_element_type=jnp.float32)      # (TB, 12)
    out = (w[:, 0:1] * o[:, 0:3] + w[:, 1:2] * o[:, 3:6]
           + w[:, 2:3] * o[:, 6:9] + w[:, 3:4] * o[:, 9:12]) + bh_ref[...]

    # Multi-sample dropout is the identity in eval -> single head term.
    # NOTE: (TB, 3) store is a masked vst; negligible traffic at N_CLASSES=3.
    out_ref[...] = out.astype(out_ref.dtype)


def _tpu_vmem_bytes():
    try:
        info = pltpu.get_tpu_info()
        cap = getattr(info, "vmem_capacity_bytes", None)
        if cap:
            return int(cap)
    except Exception:
        pass
    return 64 * 1024 * 1024   # conservative fallback (v7x per-TC)


def _vmem_limit_bytes():
    cap = _tpu_vmem_bytes()
    # ~3/4 of physical, capped; leaves headroom for compiler internal scratch.
    return min((3 * cap) // 4, 100 * 1024 * 1024)


def _choose_tb(B, flat_dim, itemsize):
    """Batch-tile rows per grid step (generation-aware, sublane-aligned)."""
    cap_bytes = _tpu_vmem_bytes()
    mult = 16 if itemsize < 4 else 8            # bf16 packs 16 rows / sublane pair
    # Double-buffered input blocks get ~3/8 of VMEM; weights / intermediates /
    # compiler scratch get the rest.
    budget = (3 * cap_bytes) // 8
    cap_rows = max(mult, budget // (2 * flat_dim * itemsize))
    tb = min(B, cap_rows)
    if B >= 2 * mult:
        # >=2 grid steps: lets v7x shard across both TensorCores and keeps the
        # input DMA pipeline double-buffered.
        tb = min(tb, B // 2)
    tb = max(mult, (tb // mult) * mult)
    while tb > mult and B % tb:
        tb -= mult
    if B % tb:
        return B                                 # single full-batch block
    return tb


def my_model_forward(x, params, tb=None):
    B, C, H, W = x.shape
    l = H // 2
    F = N_FEATURES
    CHW = C * H * W

    # Free reshape (no HBM round trip): flat index = c*H*W + h*W + w.
    # Stream activations as bf16 (halves HBM traffic); weights stay f32.
    x_flat = x.reshape(B, CHW).astype(jnp.bfloat16)

    # ---- fold quadrant GAP + backbone projection into one (CHW, 4F) weight --
    hh = jnp.arange(H) < l
    ww = jnp.arange(W) < l
    masks = jnp.stack([
        hh[:, None] & ww[None, :],      # q=0: top-left     (matches h1)
        hh[:, None] & ~ww[None, :],     # q=1: top-right    (matches h2)
        ~hh[:, None] & ww[None, :],     # q=2: bottom-left  (matches h3)
        ~hh[:, None] & ~ww[None, :],    # q=3: bottom-right (matches h4)
    ], axis=0).astype(jnp.float32)                                  # (4, H, W)
    w_pool = (jnp.einsum('cf,qhw->chwqf', params["wb"], masks)
              .reshape(CHW, 4 * F)) / float(l * l)                  # (CHW, 4F)
    bb4 = jnp.tile(params["bb"], (1, 4))                            # (1, 4F)

    # ---- block-diagonal attention MLP + head (all 4 quadrants in one pass) --
    eye4 = jnp.eye(4, dtype=jnp.float32)
    w1b = jnp.kron(eye4, params["w1"])                              # (4F, 4A)
    b1b = jnp.tile(params["b1"], (1, 4))                            # (1, 4A)
    w2b = jnp.kron(eye4, params["w2"])                              # (4A, 4)
    b2b = jnp.tile(params["b2"], (1, 4))                            # (1, 4)
    whb = jnp.kron(eye4, params["wh"])                              # (4F, 12)
    bh = params["bh"]                                               # (1, 3)

    if tb is None:
        tb = _choose_tb(B, CHW, x_flat.dtype.itemsize)
    assert B % tb == 0, (B, tb)
    grid = (B // tb,)

    def const(shape):
        nd = len(shape)
        return pl.BlockSpec(shape, lambda b, _nd=nd: (0,) * _nd)

    weights = (w_pool, bb4, w1b, b1b, w2b, b2b, whb, bh)
    in_specs = ([pl.BlockSpec((tb, CHW), lambda b: (b, 0))]         # lane-dense input
                + [const(wt.shape) for wt in weights])
    out_spec = pl.BlockSpec((tb, N_CLASSES), lambda b: (b, 0))

    return pl.pallas_call(
        _model_kernel,
        out_shape=jax.ShapeDtypeStruct((B, N_CLASSES), jnp.float32),
        grid=grid,
        in_specs=in_specs,
        out_specs=out_spec,
        compiler_params=pltpu.CompilerParams(
            dimension_semantics=("parallel",),     # v7x: shard batch over 2 TCs
            vmem_limit_bytes=_vmem_limit_bytes(),  # generation-aware
        ),
    )(x_flat, *weights)


def init_params(key, channels):
    ks = jax.random.split(key, 8)
    return {
        "wb": jax.random.normal(ks[0], (channels, N_FEATURES), jnp.float32) * 0.2,
        "bb": jax.random.normal(ks[1], (1, N_FEATURES), jnp.float32) * 0.02,
        "w1": jax.random.normal(ks[2], (N_FEATURES, ATT_HIDDEN), jnp.float32) * 0.05,
        "b1": jax.random.normal(ks[3], (1, ATT_HIDDEN), jnp.float32) * 0.02,
        "w2": jax.random.normal(ks[4], (ATT_HIDDEN, 1), jnp.float32) * 0.05,
        "b2": jax.random.normal(ks[5], (1, 1), jnp.float32) * 0.02,
        "wh": jax.random.normal(ks[6], (N_FEATURES, N_CLASSES), jnp.float32) * 0.1,
        "bh": jax.random.normal(ks[7], (1, N_CLASSES), jnp.float32) * 0.02,
    }


def reference_forward(x, params):
    l = x.shape[2] // 2

    def backbone(xq):
        pooled = jnp.mean(xq, axis=(2, 3))
        return pooled @ params["wb"] + params["bb"]

    def att(h):
        return jnp.tanh(h @ params["w1"] + params["b1"]) @ params["w2"] + params["b2"]

    h1 = backbone(x[:, :, :l, :l])
    h2 = backbone(x[:, :, :l, l:])
    h3 = backbone(x[:, :, l:, :l])
    h4 = backbone(x[:, :, l:, l:])
    scores = jnp.concatenate([att(h1), att(h2), att(h3), att(h4)], axis=1)
    w = jax.nn.softmax(scores, axis=1)
    h = (h1 * w[:, 0:1] + h2 * w[:, 1:2] + h3 * w[:, 2:3] + h4 * w[:, 3:4])
    return h @ params["wh"] + params["bh"]


if __name__ == "__main__":
    key = jax.random.PRNGKey(0)
    k_x, k_p = jax.random.split(key)

    B, C, H, W = 32, 4, 16, 16
    x = jax.random.normal(k_x, (B, C, H, W), jnp.float32)
    params = init_params(k_p, C)

    # _choose_tb -> tb=16 (multiple of 16, >=2 grid steps): exercises the
    # batch-tiled, double-buffered, megacore-shardable path.
    out = my_model_forward(x, params)
    out = jax.block_until_ready(out)

    ref = reference_forward(x, params)
    assert out.shape == (B, N_CLASSES)
    # Tolerance covers the bf16 quantization of the streamed activations.
    assert jnp.allclose(out, ref, rtol=4e-3, atol=4e-3), (out, ref)

    print("KERNEL_OK")
</pallas_src>

<mosaic_0001>
module attributes {stable_mosaic.version = 11 : i64} {
  func.func @_model_kernel(%arg0: i32, %arg1: memref<16x1024xbf16, #tpu.memory_space<vmem>>, %arg2: memref<1024x128xf32, #tpu.memory_space<vmem>>, %arg3: memref<1x128xf32, #tpu.memory_space<vmem>>, %arg4: memref<128x1024xf32, #tpu.memory_space<vmem>>, %arg5: memref<1x1024xf32, #tpu.memory_space<vmem>>, %arg6: memref<1024x4xf32, #tpu.memory_space<vmem>>, %arg7: memref<1x4xf32, #tpu.memory_space<vmem>>, %arg8: memref<128x12xf32, #tpu.memory_space<vmem>>, %arg9: memref<1x3xf32, #tpu.memory_space<vmem>>, %arg10: memref<16x3xf32, #tpu.memory_space<vmem>>) attributes {dimension_semantics = [#tpu.dimension_semantics<parallel>], iteration_bounds = array<i64: 2>, scalar_prefetch = 0 : i64, scratch_operands = 0 : i64, tpu.core_type = #tpu.core_type<tc>, window_params = [{transform_indices = @transform_0, window_bounds = array<i64: 16, 1024>}, {pipeline_mode = #tpu.pipeline_mode<synchronous>, transform_indices = @transform_1, window_bounds = array<i64: 1024, 128>}, {pipeline_mode = #tpu.pipeline_mode<synchronous>, transform_indices = @transform_2, window_bounds = array<i64: 1, 128>}, {pipeline_mode = #tpu.pipeline_mode<synchronous>, transform_indices = @transform_3, window_bounds = array<i64: 128, 1024>}, {pipeline_mode = #tpu.pipeline_mode<synchronous>, transform_indices = @transform_4, window_bounds = array<i64: 1, 1024>}, {pipeline_mode = #tpu.pipeline_mode<synchronous>, transform_indices = @transform_5, window_bounds = array<i64: 1024, 4>}, {pipeline_mode = #tpu.pipeline_mode<synchronous>, transform_indices = @transform_6, window_bounds = array<i64: 1, 4>}, {pipeline_mode = #tpu.pipeline_mode<synchronous>, transform_indices = @transform_7, window_bounds = array<i64: 128, 12>}, {pipeline_mode = #tpu.pipeline_mode<synchronous>, transform_indices = @transform_8, window_bounds = array<i64: 1, 3>}, {transform_indices = @transform_9, window_bounds = array<i64: 16, 3>}]} {
    %c0 = arith.constant 0 : index
    %c0_0 = arith.constant 0 : index
    %0 = vector.load %arg1[%c0, %c0_0] : memref<16x1024xbf16, #tpu.memory_space<vmem>>, vector<16x1024xbf16>
    %1 = arith.extf %0 : vector<16x1024xbf16> to vector<16x1024xf32>
    %c0_1 = arith.constant 0 : index
    %c0_2 = arith.constant 0 : index
    %2 = vector.load %arg2[%c0_1, %c0_2] : memref<1024x128xf32, #tpu.memory_space<vmem>>, vector<1024x128xf32>
    %cst = arith.constant dense<0.000000e+00> : vector<16x128xf32>
    %3 = tpu.matmul %1, %2, %cst {dimension_numbers = #tpu.dot_dimension_numbers<[1], [0], [0], [1], [0, 0, 1, 1], [], []>} : vector<16x1024xf32>, vector<1024x128xf32>, vector<16x128xf32> -> vector<16x128xf32>
    %c0_3 = arith.constant 0 : index
    %c0_4 = arith.constant 0 : index
    %4 = vector.load %arg3[%c0_3, %c0_4] : memref<1x128xf32, #tpu.memory_space<vmem>>, vector<1x128xf32>
    %5 = vector.broadcast %4 : vector<1x128xf32> to vector<16x128xf32>
    %6 = arith.addf %3, %5 : vector<16x128xf32>
    %c0_5 = arith.constant 0 : index
    %c0_6 = arith.constant 0 : index
    %7 = vector.load %arg4[%c0_5, %c0_6] : memref<128x1024xf32, #tpu.memory_space<vmem>>, vector<128x1024xf32>
    %cst_7 = arith.constant dense<0.000000e+00> : vector<16x1024xf32>
    %8 = tpu.matmul %6, %7, %cst_7 {dimension_numbers = #tpu.dot_dimension_numbers<[1], [0], [0], [1], [0, 0, 1, 1], [], []>} : vector<16x128xf32>, vector<128x1024xf32>, vector<16x1024xf32> -> vector<16x1024xf32>
    %c0_8 = arith.constant 0 : index
    %c0_9 = arith.constant 0 : index
    %9 = vector.load %arg5[%c0_8, %c0_9] : memref<1x1024xf32, #tpu.memory_space<vmem>>, vector<1x1024xf32>
    %10 = vector.broadcast %9 : vector<1x1024xf32> to vector<16x1024xf32>
    %11 = arith.addf %8, %10 : vector<16x1024xf32>
    %12 = math.tanh %11 : vector<16x1024xf32>
    %c0_10 = arith.constant 0 : index
    %c0_11 = arith.constant 0 : index
    %13 = vector.load %arg6[%c0_10, %c0_11] : memref<1024x4xf32, #tpu.memory_space<vmem>>, vector<1024x4xf32>
    %cst_12 = arith.constant dense<0.000000e+00> : vector<16x4xf32>
    %14 = tpu.matmul %12, %13, %cst_12 {dimension_numbers = #tpu.dot_dimension_numbers<[1], [0], [0], [1], [0, 0, 1, 1], [], []>} : vector<16x1024xf32>, vector<1024x4xf32>, vector<16x4xf32> -> vector<16x4xf32>
    %c0_13 = arith.constant 0 : index
    %c0_14 = arith.constant 0 : index
    %15 = vector.load %arg7[%c0_13, %c0_14] : memref<1x4xf32, #tpu.memory_space<vmem>>, vector<1x4xf32>
    %16 = vector.broadcast %15 : vector<1x4xf32> to vector<16x4xf32>
    %17 = arith.addf %14, %16 : vector<16x4xf32>
    %cst_15 = arith.constant dense<0xFF800000> : vector<16xf32>
    %18 = vector.multi_reduction <maximumf>, %17, %cst_15 [1] : vector<16x4xf32> to vector<16xf32>
    %19 = vector.shape_cast %18 : vector<16xf32> to vector<16x1xf32>
    %20 = vector.broadcast %19 : vector<16x1xf32> to vector<16x4xf32>
    %21 = arith.subf %17, %20 : vector<16x4xf32>
    %22 = math.exp %21 : vector<16x4xf32>
    %cst_16 = arith.constant dense<0.000000e+00> : vector<16xf32>
    %23 = vector.multi_reduction <add>, %22, %cst_16 [1] : vector<16x4xf32> to vector<16xf32>
    %24 = vector.shape_cast %23 : vector<16xf32> to vector<16x1xf32>
    %25 = vector.broadcast %24 : vector<16x1xf32> to vector<16x4xf32>
    %26 = arith.divf %22, %25 : vector<16x4xf32>
    %c0_17 = arith.constant 0 : index
    %c0_18 = arith.constant 0 : index
    %27 = vector.load %arg8[%c0_17, %c0_18] : memref<128x12xf32, #tpu.memory_space<vmem>>, vector<128x12xf32>
    %cst_19 = arith.constant dense<0.000000e+00> : vector<16x12xf32>
    %28 = tpu.matmul %6, %27, %cst_19 {dimension_numbers = #tpu.dot_dimension_numbers<[1], [0], [0], [1], [0, 0, 1, 1], [], []>} : vector<16x128xf32>, vector<128x12xf32>, vector<16x12xf32> -> vector<16x12xf32>
    %29 = vector.extract_strided_slice %26 {offsets = [0, 0], sizes = [16, 1], strides = [1, 1]} : vector<16x4xf32> to vector<16x1xf32>
    %30 = vector.extract_strided_slice %28 {offsets = [0, 0], sizes = [16, 3], strides = [1, 1]} : vector<16x12xf32> to vector<16x3xf32>
    %31 = vector.broadcast %29 : vector<16x1xf32> to vector<16x3xf32>
    %32 = arith.mulf %31, %30 : vector<16x3xf32>
    %33 = vector.extract_strided_slice %26 {offsets = [0, 1], sizes = [16, 1], strides = [1, 1]} : vector<16x4xf32> to vector<16x1xf32>
    %34 = vector.extract_strided_slice %28 {offsets = [0, 3], sizes = [16, 3], strides = [1, 1]} : vector<16x12xf32> to vector<16x3xf32>
    %35 = vector.broadcast %33 : vector<16x1xf32> to vector<16x3xf32>
    %36 = arith.mulf %35, %34 : vector<16x3xf32>
    %37 = arith.addf %32, %36 : vector<16x3xf32>
    %38 = vector.extract_strided_slice %26 {offsets = [0, 2], sizes = [16, 1], strides = [1, 1]} : vector<16x4xf32> to vector<16x1xf32>
    %39 = vector.extract_strided_slice %28 {offsets = [0, 6], sizes = [16, 3], strides = [1, 1]} : vector<16x12xf32> to vector<16x3xf32>
    %40 = vector.broadcast %38 : vector<16x1xf32> to vector<16x3xf32>
    %41 = arith.mulf %40, %39 : vector<16x3xf32>
    %42 = arith.addf %37, %41 : vector<16x3xf32>
    %43 = vector.extract_strided_slice %26 {offsets = [0, 3], sizes = [16, 1], strides = [1, 1]} : vector<16x4xf32> to vector<16x1xf32>
    %44 = vector.extract_strided_slice %28 {offsets = [0, 9], sizes = [16, 3], strides = [1, 1]} : vector<16x12xf32> to vector<16x3xf32>
    %45 = vector.broadcast %43 : vector<16x1xf32> to vector<16x3xf32>
    %46 = arith.mulf %45, %44 : vector<16x3xf32>
    %47 = arith.addf %42, %46 : vector<16x3xf32>
    %c0_20 = arith.constant 0 : index
    %c0_21 = arith.constant 0 : index
    %48 = vector.load %arg9[%c0_20, %c0_21] : memref<1x3xf32, #tpu.memory_space<vmem>>, vector<1x3xf32>
    %49 = vector.broadcast %48 : vector<1x3xf32> to vector<16x3xf32>
    %50 = arith.addf %47, %49 : vector<16x3xf32>
    %c0_22 = arith.constant 0 : index
    %c0_23 = arith.constant 0 : index
    %51 = vector.load %arg10[%c0_22, %c0_23] : memref<16x3xf32, #tpu.memory_space<vmem>>, vector<16x3xf32>
    tpu.vector_store %arg10[%c0_22, %c0_23], %50 {strides = array<i32>} : memref<16x3xf32, #tpu.memory_space<vmem>>, vector<16x3xf32>,
    return
  }
  func.func @transform_0(%arg0: i32) -> (i32, i32) {
    %c0_i32 = arith.constant 0 : i32
    %c0_i32_0 = arith.constant 0 : i32
    return %arg0, %c0_i32 : i32, i32
  }
  func.func @transform_1(%arg0: i32) -> (i32, i32) {
    %c0_i32 = arith.constant 0 : i32
    %c0_i32_0 = arith.constant 0 : i32
    %c0_i32_1 = arith.constant 0 : i32
    return %c0_i32, %c0_i32_0 : i32, i32
  }
  func.func @transform_2(%arg0: i32) -> (i32, i32) {
    %c0_i32 = arith.constant 0 : i32
    %c0_i32_0 = arith.constant 0 : i32
    %c0_i32_1 = arith.constant 0 : i32
    return %c0_i32, %c0_i32_0 : i32, i32
  }
  func.func @transform_3(%arg0: i32) -> (i32, i32) {
    %c0_i32 = arith.constant 0 : i32
    %c0_i32_0 = arith.constant 0 : i32
    %c0_i32_1 = arith.constant 0 : i32
    return %c0_i32, %c0_i32_0 : i32, i32
  }
  func.func @transform_4(%arg0: i32) -> (i32, i32) {
    %c0_i32 = arith.constant 0 : i32
    %c0_i32_0 = arith.constant 0 : i32
    %c0_i32_1 = arith.constant 0 : i32
    return %c0_i32, %c0_i32_0 : i32, i32
  }
  func.func @transform_5(%arg0: i32) -> (i32, i32) {
    %c0_i32 = arith.constant 0 : i32
    %c0_i32_0 = arith.constant 0 : i32
    %c0_i32_1 = arith.constant 0 : i32
    return %c0_i32, %c0_i32_0 : i32, i32
  }
  func.func @transform_6(%arg0: i32) -> (i32, i32) {
    %c0_i32 = arith.constant 0 : i32
    %c0_i32_0 = arith.constant 0 : i32
    %c0_i32_1 = arith.constant 0 : i32
    return %c0_i32, %c0_i32_0 : i32, i32
  }
  func.func @transform_7(%arg0: i32) -> (i32, i32) {
    %c0_i32 = arith.constant 0 : i32
    %c0_i32_0 = arith.constant 0 : i32
    %c0_i32_1 = arith.constant 0 : i32
    return %c0_i32, %c0_i32_0 : i32, i32
  }
  func.func @transform_8(%arg0: i32) -> (i32, i32) {
    %c0_i32 = arith.constant 0 : i32
    %c0_i32_0 = arith.constant 0 : i32
    %c0_i32_1 = arith.constant 0 : i32
    return %c0_i32, %c0_i32_0 : i32, i32
  }
  func.func @transform_9(%arg0: i32) -> (i32, i32) {
    %c0_i32 = arith.constant 0 : i32
    %c0_i32_0 = arith.constant 0 : i32
    return %arg0, %c0_i32 : i32, i32
  }
}

</mosaic_0001>

<bundles_post_ra>
// kernel: tpu_custom_call.1
= control target key start
LH: loop header
LB: loop body
LE: loop exit
PB: predicated region body
PF: predicated region fallthrough
CT: control target
= control target key end

     0   :  { %14 = vsyncpa [#allocation3], 0  ;;  %s2977_s30 = smov 0   ;;  %s3950_s0 = inlined_call_operand.vmem [shape: bf16[32,1024], index: 0, kind: input, shape index: {}]   ;;  %s3951_s1 = inlined_call_operand.vmem [shape: f32[1024,128], index: 1, kind: input, shape index: {}]   ;;  %s3952_s2 = inlined_call_operand.vmem [shape: f32[1,128], index: 2, kind: input, shape index: {}]   ;;  %s3953_s3 = inlined_call_operand.hbm [shape: f32[128,1024], index: 3, kind: input, shape index: {}]   ;;  %s3954_s4 = inlined_call_operand.vmem [shape: f32[1,1024], index: 4, kind: input, shape index: {}]   ;;  %s3955_s5 = inlined_call_operand.vmem [shape: f32[1024,4], index: 5, kind: input, shape index: {}]   ;;  %s3956_s6 = inlined_call_operand.vmem [shape: f32[1,4], index: 6, kind: input, shape index: {}]   ;;  %s3957_s7 = inlined_call_operand.vmem [shape: f32[128,12], index: 7, kind: input, shape index: {}]   ;;  %s3958_s8 = inlined_call_operand.vmem [shape: f32[1,3], index: 8, kind: input, shape index: {}]   ;;  %s3959_s9 = inlined_call_operand.vmem [shape: f32[32,3], index: 9, kind: output, shape index: {}]  }
   0x1 LB: > { %s2008_s10 = sadd.s32 4294967295, %s2914_s30   ;;  %p2010_p0 = scmp.ge.s32.totalorder %s2914_s30, 1  ;;  %s2914_s30 = sphi %s2977_s30, %s20_s30  }
   0x2   : > { %p245_p1 = scmp.lt.s32.totalorder %s2914_s30, 3  ;;  %s2916_s11 = smov [#allocation2]  }
   0x3   : > { %s263_s12 = sshll.u32 %s2916_s11, 4  ;;  %p2991_p3 = scmp.eq.s32.totalorder %s2008_s10, 0  ;;  %s264_s12 = int_to_ptr.vmem [resolvable:$true] %s263_s12 }
   0x4   : > { %p2985_p2 = pnand %p2010_p0, %p245_p1  ;;  %s2876_s18 = scalar_lea.hbm %s3953_s3, 16384 }
   0x5   : > { %s3964_s14 = scalar_select %p2991_p3, 1, 0 }
   0x6   : > { %s3963_s13 = scalar_select %p2985_p2, 1, 0 }
   0x7   : > { %p2803_p4 = pneg %p2985_p2  ;;  %p2877_p6 = scmp.ne.s32.totalorder %s3953_s3, %s2876_s18 }
   0x8   : > { %p2883_p10 = scmp.lt.u32.totalorder %s2876_s18, %s3953_s3 }
   0x9   : > { %p2999_p5 = pnand %p2991_p3, %p2803_p4 }
   0xb   : > { %p2878_p7 = pneg %p2999_p5 }
   0xd   : > { %p2879_p8 = pnand %p2878_p7, %p2877_p6 }
   0xf   : > { %p2880_p9 = pneg %p2879_p8 }
  0x11   : > { %p2885_p11 = pnand %p2883_p10, %p2880_p9 }
  0x13   : > { %2888 = shalt.err (!%p2885_p11)
}
  0x14   : > { %s2889_s23 = scalar_lea.vmem %s264_s12, 16384  ;;  %p2897_p1 = scmp.lt.s32.totalorder %s264_s12, %s264_s12 }
  0x15   : > { %p2890_p12 = scmp.ne.s32.totalorder %s264_s12, %s2889_s23  ;;  %p2898_p4 = scmp.lt.s32.totalorder %s2889_s23, %s2889_s23 }
  0x17   : > { %p2892_p13 = pnand %p2890_p12, %p2878_p7  ;;  %p2899_p3 = por %p2898_p4, %p2897_p1 }
  0x19   : > { %p2893_p0 = pneg %p2892_p13 }
  0x1b   : > { %p2900_p2 = pnand %p2899_p3, %p2893_p0 }
  0x1d   : > { %2903 = shalt.err (!%p2900_p2)
}
  0x1e   : > { %s2917_s24 = smov 1024   ;;  %s2918_s25 = smov 64  }
  0x1f   : > { %2806 = dma.hbm_to_vmem [thread:$0]  (!%p2999_p5), %s3953_s3, 16384, %s264_s12, [#allocation3], %s2917_s24, %s2917_s24, %s2918_s25  }
  0x20   : > { %p3966_p6 = scmp.ne.s32.totalorder %s3963_s13, 0 }
  0x21   : > { %p3967_p8 = scmp.ne.s32.totalorder (!%p3966_p6), %s3964_s14, 0 }
  0x22   : > { %304 = sbr.rel (%p3966_p6) target bundleno = 1390 (0x56e), region = 56 }
  0x29   : > { %2909 = dma.done.wait (%p3967_p8), [#allocation3], 16384  }
  0x2a   : > { %2911 = vsyncadd (%p3967_p8), [#allocation3], 4294950912  ;;  %v394_v0 = vld [vmem:[%s3951_s1 + $0x80] sm:$0xff]  ;;  %v395_v1 = vld [vmem:[%s3951_s1 + $0x88] sm:$0xff]  ;;  %s3072_s20 = sshll.u32 %s2008_s10, 1  ;;  %vm1742_vm0 = vcmask 31744  }
  0x2b   : > { %v378_v2 = vld [vmem:[%s3951_s1] sm:$0xff]  ;;  %v2383_v3 = vpack.c.bf16 %v395_v1, %v394_v0  ;;  %v379_v4 = vld [vmem:[%s3951_s1 + $0x8] sm:$0xff]  ;;  %v396_v11 = vld [vmem:[%s3951_s1 + $0x90] sm:$0xff]  ;;  %p342_p2 = scmp.lt.s32.totalorder %s3072_s20, 3  ;;  %s2924_s21 = smov 125   ;;  %vm1937_vm1 = vcmask 23552  }
  0x2c   : > { %v426_v5 = vld [vmem:[%s3951_s1 + $0x180] sm:$0xff]  ;;  %v427_v6 = vld [vmem:[%s3951_s1 + $0x188] sm:$0xff]  ;;  %v2385_v7 = vpack.c.bf16 %v379_v4, %v378_v2  ;;  %v397_v13 = vld [vmem:[%s3951_s1 + $0x98] sm:$0xff]  ;;  %s2925_s23 = smov 122   ;;  %s2926_s24 = smov 119  }
  0x2d   : > { %v2415_v8 = vpack.c.bf16 %v427_v6, %v426_v5  ;;  %v410_v9 = vld [vmem:[%s3951_s1 + $0x100] sm:$0xff]  ;;  %v411_v10 = vld [vmem:[%s3951_s1 + $0x108] sm:$0xff]  ;;  %2384 = vmatprep.subr.bf16.mxu0 %v2383_v3  ;;  %v380_v14 = vld [vmem:[%s3951_s1 + $0x10] sm:$0xff]  ;;  %v2387_v16 = vpack.c.bf16 %v397_v13, %v396_v11  ;;  %s3969_s20 = smov (!%p342_p2, %s3072_s20), 3 }
  0x2e   : > { %v2417_v12 = vpack.c.bf16 %v411_v10, %v410_v9  ;;  %v381_v15 = vld [vmem:[%s3951_s1 + $0x18] sm:$0xff]  ;;  %2386 = vmatpush3.bf16.msra.mxu0 %v2385_v7  ;;  %v428_v18 = vld [vmem:[%s3951_s1 + $0x190] sm:$0xff]  ;;  %v398_v23 = vld [vmem:[%s3951_s1 + $0xa0] sm:$0xff]  ;;  %s2025_s22 = sshll.u32 %s3969_s20, 5  ;;  %s2019_s25 = sshll.u32 %s3969_s20, 3 }
  0x2f   : > { %2416 = vmatprep.subr.bf16.mxu1 %v2415_v8  ;;  %v2389_v17 = vpack.c.bf16 %v381_v15, %v380_v14  ;;  %v429_v19 = vld [vmem:[%s3951_s1 + $0x198] sm:$0xff]  ;;  %v412_v20 = vld [vmem:[%s3951_s1 + $0x110] sm:$0xff]  ;;  %v399_v24 = vld [vmem:[%s3951_s1 + $0xa8] sm:$0xff]  ;;  %2388 = vmatprep.subr.bf16.mxu0 %v2387_v16  ;;  %s3189_s18 = scalar_lea.vmem %s3950_s0, %s2025_s22  ;;  %s352_s28 = scalar_lea.vmem %s3959_s9, %s2019_s25 }
  0x30   : > { %2418 = vmatpush3.bf16.msra.mxu1 %v2417_v12  ;;  %v2419_v21 = vpack.c.bf16 %v429_v19, %v428_v18  ;;  %v413_v22 = vld [vmem:[%s3951_s1 + $0x118] sm:$0xff]  ;;  %v2391_v26 = vpack.c.bf16 %v399_v24, %v398_v23  ;;  %v382_v27 = vld [vmem:[%s3951_s1 + $0x20] sm:$0xff]  ;;  %v383_v28 = vld [vmem:[%s3951_s1 + $0x28] sm:$0xff] }
  0x31   : > { %v2421_v25 = vpack.c.bf16 %v413_v22, %v412_v20  ;;  %v430_v29 = vld [vmem:[%s3951_s1 + $0x1a0] sm:$0xff]  ;;  %v431_v30 = vld [vmem:[%s3951_s1 + $0x1a8] sm:$0xff]  ;;  %v2393_v33 = vpack.c.bf16 %v383_v28, %v382_v27  ;;  %v400_v35 = vld [vmem:[%s3951_s1 + $0xb0] sm:$0xff] }
  0x32   : > { %2420 = vmatprep.subr.bf16.mxu1 %v2419_v21  ;;  %v414_v31 = vld [vmem:[%s3951_s1 + $0x120] sm:$0xff]  ;;  %v415_v32 = vld [vmem:[%s3951_s1 + $0x128] sm:$0xff]  ;;  %2390 = vmatpush3.bf16.msra.mxu0 %v2389_v17  ;;  %v2423_v34 = vpack.c.bf16 %v431_v30, %v430_v29  ;;  %v401_v36 = vld [vmem:[%s3951_s1 + $0xb8] sm:$0xff] }
  0x33   : > { %v384_v37 = vld [vmem:[%s3951_s1 + $0x30] sm:$0xff]  ;;  %2392 = vmatprep.subr.bf16.mxu0 %v2391_v26  ;;  %v2425_v38 = vpack.c.bf16 %v415_v32, %v414_v31  ;;  %v2395_v39 = vpack.c.bf16 %v401_v36, %v400_v35  ;;  %v385_v40 = vld [vmem:[%s3951_s1 + $0x38] sm:$0xff]  ;;  %v402_v46 = vld [vmem:[%s3951_s1 + $0xc0] sm:$0xff] }
  0x34   : > { %2422 = vmatpush3.bf16.msra.mxu1 %v2421_v25  ;;  %v432_v41 = vld [vmem:[%s3951_s1 + $0x1b0] sm:$0xff]  ;;  %v433_v42 = vld [vmem:[%s3951_s1 + $0x1b8] sm:$0xff]  ;;  %v403_v47 = vld [vmem:[%s3951_s1 + $0xc8] sm:$0xff]  ;;  %v2397_v48 = vpack.c.bf16 %v385_v40, %v384_v37 }
  0x35   : > { %2424 = vmatprep.subr.bf16.mxu1 %v2423_v34  ;;  %v2427_v43 = vpack.c.bf16 %v433_v42, %v432_v41  ;;  %v416_v44 = vld [vmem:[%s3951_s1 + $0x130] sm:$0xff]  ;;  %v417_v45 = vld [vmem:[%s3951_s1 + $0x138] sm:$0xff]  ;;  %v434_v49 = vld [vmem:[%s3951_s1 + $0x1c0] sm:$0xff]  ;;  %v2399_v52 = vpack.c.bf16 %v403_v47, %v402_v46 }
  0x36   : > { %2394 = vmatpush3.bf16.msra.mxu0 %v2393_v33  ;;  %v435_v50 = vld [vmem:[%s3951_s1 + $0x1c8] sm:$0xff]  ;;  %v2429_v51 = vpack.c.bf16 %v417_v45, %v416_v44  ;;  %v386_v53 = vld [vmem:[%s3951_s1 + $0x40] sm:$0xff]  ;;  %v404_v58 = vld [vmem:[%s3951_s1 + $0xd0] sm:$0xff] }
  0x37   : > { %2396 = vmatprep.subr.bf16.mxu0 %v2395_v39  ;;  %v387_v54 = vld [vmem:[%s3951_s1 + $0x48] sm:$0xff]  ;;  %v418_v55 = vld [vmem:[%s3951_s1 + $0x140] sm:$0xff]  ;;  %v2431_v56 = vpack.c.bf16 %v435_v50, %v434_v49  ;;  %v405_v59 = vld [vmem:[%s3951_s1 + $0xd8] sm:$0xff] }
  0x38   : > { %2426 = vmatpush3.bf16.msra.mxu1 %v2425_v38  ;;  %v419_v57 = vld [vmem:[%s3951_s1 + $0x148] sm:$0xff]  ;;  %v436_v60 = vld [vmem:[%s3951_s1 + $0x1d0] sm:$0xff]  ;;  %v437_v61 = vld [vmem:[%s3951_s1 + $0x1d8] sm:$0xff]  ;;  %v2401_v62 = vpack.c.bf16 %v387_v54, %v386_v53  ;;  %v2403_v0 = vpack.c.bf16 %v405_v59, %v404_v58 }
  0x39   : > { %2428 = vmatprep.subr.bf16.mxu1 %v2427_v43  ;;  %v2433_v63 = vpack.c.bf16 %v419_v57, %v418_v55  ;;  %v388_v1 = vld [vmem:[%s3951_s1 + $0x50] sm:$0xff]  ;;  %v389_v2 = vld [vmem:[%s3951_s1 + $0x58] sm:$0xff]  ;;  %v2435_v4 = vpack.c.bf16 %v437_v61, %v436_v60  ;;  %v406_v6 = vld [vmem:[%s3951_s1 + $0xe0] sm:$0xff] }
  0x3a   : > { %2398 = vmatpush3.bf16.msra.mxu0 %v2397_v48  ;;  %v420_v3 = vld [vmem:[%s3951_s1 + $0x150] sm:$0xff]  ;;  %v421_v5 = vld [vmem:[%s3951_s1 + $0x158] sm:$0xff]  ;;  %v407_v7 = vld [vmem:[%s3951_s1 + $0xe8] sm:$0xff]  ;;  %v2405_v10 = vpack.c.bf16 %v389_v2, %v388_v1 }
  0x3b   : > { %2400 = vmatprep.subr.bf16.mxu0 %v2399_v52  ;;  %v438_v8 = vld [vmem:[%s3951_s1 + $0x1e0] sm:$0xff]  ;;  %v439_v9 = vld [vmem:[%s3951_s1 + $0x1e8] sm:$0xff]  ;;  %v2437_v13 = vpack.c.bf16 %v421_v5, %v420_v3  ;;  %v2407_v14 = vpack.c.bf16 %v407_v7, %v406_v6  ;;  %v408_v19 = vld [vmem:[%s3951_s1 + $0xf0] sm:$0xff] }
  0x3c   : > { %2430 = vmatpush3.bf16.msra.mxu1 %v2429_v51  ;;  %v390_v11 = vld [vmem:[%s3951_s1 + $0x60] sm:$0xff]  ;;  %v391_v12 = vld [vmem:[%s3951_s1 + $0x68] sm:$0xff]  ;;  %v2439_v18 = vpack.c.bf16 %v439_v9, %v438_v8  ;;  %v409_v20 = vld [vmem:[%s3951_s1 + $0xf8] sm:$0xff] }
  0x3d   : > { %2432 = vmatprep.subr.bf16.mxu1 %v2431_v56  ;;  %v422_v15 = vld [vmem:[%s3951_s1 + $0x160] sm:$0xff]  ;;  %v423_v16 = vld [vmem:[%s3951_s1 + $0x168] sm:$0xff]  ;;  %v440_v23 = vld [vmem:[%s3951_s1 + $0x1f0] sm:$0xff]  ;;  %v2409_v26 = vpack.c.bf16 %v391_v12, %v390_v11  ;;  %v2411_v28 = vpack.c.bf16 %v409_v20, %v408_v19 }
  0x3e   : > { %2402 = vmatpush3.bf16.msra.mxu0 %v2401_v62  ;;  %v354_v17 = vld [vmem:[%s3189_s18] sm:$0xff]  ;;  %v355_v22 = vld [vmem:[%s3189_s18 + $0x8] sm:$0xff]  ;;  %v441_v24 = vld [vmem:[%s3951_s1 + $0x1f8] sm:$0xff]  ;;  %v2441_v27 = vpack.c.bf16 %v423_v16, %v422_v15 }
  0x3f   : > { %2404 = vmatprep.subr.bf16.mxu0 %v2403_v0  ;;  %v363_v21 = vunpack.c.h.bf16 %v354_v17  ;;  %v365_v25 = vunpack.c.h.bf16 %v355_v22  ;;  %v392_v29 = vld [vmem:[%s3951_s1 + $0x70] sm:$0xff]  ;;  %v393_v30 = vld [vmem:[%s3951_s1 + $0x78] sm:$0xff]  ;;  %v2443_v32 = vpack.c.bf16 %v441_v24, %v440_v23  ;;  %v458_v34 = vld [vmem:[%s3951_s1 + $0x280] sm:$0xff]  ;;  %v362_v48 = vunpack.c.l.bf16 %v354_v17 }
  0x40   : > { %2434 = vmatpush3.bf16.msra.mxu1 %v2433_v63  ;;  %v424_v31 = vld [vmem:[%s3951_s1 + $0x170] sm:$0xff]  ;;  %v425_v33 = vld [vmem:[%s3951_s1 + $0x178] sm:$0xff]  ;;  %v459_v35 = vld [vmem:[%s3951_s1 + $0x288] sm:$0xff]  ;;  %v2413_v38 = vpack.c.bf16 %v393_v30, %v392_v29  ;;  %v364_v51 = vunpack.c.l.bf16 %v355_v22 }
  0x41   : > { %2436 = vmatprep.subr.bf16.mxu1 %v2435_v4  ;;  %577 = vmatprep.mubr.f32.mxu0 %v363_v21  ;;  %v490_v36 = vld [vmem:[%s3951_s1 + $0x380] sm:$0xff]  ;;  %v491_v37 = vld [vmem:[%s3951_s1 + $0x388] sm:$0xff]  ;;  %v2445_v39 = vpack.c.bf16 %v425_v33, %v424_v31  ;;  %v2447_v40 = vpack.c.bf16 %v459_v35, %v458_v34  ;;  %v460_v46 = vld [vmem:[%s3951_s1 + $0x290] sm:$0xff] }
  0x42   : > { %2406 = vmatpush3.bf16.msra.mxu0 %v2405_v10  ;;  %652 = vmatprep.mubr.f32.mxu1 %v365_v25  ;;  %v442_v41 = vld [vmem:[%s3951_s1 + $0x200] sm:$0xff]  ;;  %v443_v42 = vld [vmem:[%s3951_s1 + $0x208] sm:$0xff]  ;;  %v2479_v44 = vpack.c.bf16 %v491_v37, %v490_v36  ;;  %v461_v47 = vld [vmem:[%s3951_s1 + $0x298] sm:$0xff] }
  0x43   : > { %2408 = vmatprep.subr.bf16.mxu0 %v2407_v14  ;;  %v474_v43 = vld [vmem:[%s3951_s1 + $0x300] sm:$0xff]  ;;  %v475_v45 = vld [vmem:[%s3951_s1 + $0x308] sm:$0xff]  ;;  %v492_v49 = vld [vmem:[%s3951_s1 + $0x390] sm:$0xff]  ;;  %v2449_v52 = vpack.c.bf16 %v443_v42, %v442_v41  ;;  %v2451_v54 = vpack.c.bf16 %v461_v47, %v460_v46 }
  0x44   : > { %2438 = vmatpush3.bf16.msra.mxu1 %v2437_v13  ;;  %v493_v50 = vld [vmem:[%s3951_s1 + $0x398] sm:$0xff]  ;;  %v2481_v53 = vpack.c.bf16 %v475_v45, %v474_v43  ;;  %v444_v55 = vld [vmem:[%s3951_s1 + $0x210] sm:$0xff]  ;;  %v462_v60 = vld [vmem:[%s3951_s1 + $0x2a0] sm:$0xff] }
  0x45   : > { %2440 = vmatprep.subr.bf16.mxu1 %v2439_v18  ;;  %v445_v56 = vld [vmem:[%s3951_s1 + $0x218] sm:$0xff]  ;;  %v476_v57 = vld [vmem:[%s3951_s1 + $0x310] sm:$0xff]  ;;  %v2483_v58 = vpack.c.bf16 %v493_v50, %v492_v49  ;;  %v463_v61 = vld [vmem:[%s3951_s1 + $0x2a8] sm:$0xff] }
  0x46   : > { %2410 = vmatpush3.bf16.msra.mxu0 %v2409_v26  ;;  %v477_v59 = vld [vmem:[%s3951_s1 + $0x318] sm:$0xff]  ;;  %v494_v62 = vld [vmem:[%s3951_s1 + $0x3a0] sm:$0xff]  ;;  %v495_v63 = vld [vmem:[%s3951_s1 + $0x3a8] sm:$0xff]  ;;  %v2453_v0 = vpack.c.bf16 %v445_v56, %v444_v55  ;;  %v2455_v2 = vpack.c.bf16 %v463_v61, %v462_v60 }
  0x47   : > { %2412 = vmatprep.subr.bf16.mxu0 %v2411_v28  ;;  %v2485_v1 = vpack.c.bf16 %v477_v59, %v476_v57  ;;  %v446_v3 = vld [vmem:[%s3951_s1 + $0x220] sm:$0xff]  ;;  %v447_v4 = vld [vmem:[%s3951_s1 + $0x228] sm:$0xff]  ;;  %v2487_v6 = vpack.c.bf16 %v495_v63, %v494_v62  ;;  %v464_v8 = vld [vmem:[%s3951_s1 + $0x2b0] sm:$0xff] }
  0x48   : > { %2442 = vmatpush3.bf16.msra.mxu1 %v2441_v27  ;;  %v478_v5 = vld [vmem:[%s3951_s1 + $0x320] sm:$0xff]  ;;  %v479_v7 = vld [vmem:[%s3951_s1 + $0x328] sm:$0xff]  ;;  %v465_v9 = vld [vmem:[%s3951_s1 + $0x2b8] sm:$0xff]  ;;  %v2457_v12 = vpack.c.bf16 %v447_v4, %v446_v3 }
  0x49   : > { %2444 = vmatprep.subr.bf16.mxu1 %v2443_v32  ;;  %v496_v10 = vld [vmem:[%s3951_s1 + $0x3b0] sm:$0xff]  ;;  %v497_v11 = vld [vmem:[%s3951_s1 + $0x3b8] sm:$0xff]  ;;  %v358_v14 = vld [vmem:[%s3189_s18 + $0x20] sm:$0xff]  ;;  %v2489_v15 = vpack.c.bf16 %v479_v7, %v478_v5  ;;  %v2459_v16 = vpack.c.bf16 %v465_v9, %v464_v8 }
  0x4a   : > { %2414 = vmatpush3.bf16.msra.mxu0 %v2413_v38  ;;  %v448_v13 = vld [vmem:[%s3951_s1 + $0x230] sm:$0xff]  ;;  %v449_v17 = vld [vmem:[%s3951_s1 + $0x238] sm:$0xff]  ;;  %v371_v19 = vunpack.c.h.bf16 %v358_v14  ;;  %v359_v20 = vld [vmem:[%s3189_s18 + $0x28] sm:$0xff]  ;;  %v2491_v21 = vpack.c.bf16 %v497_v11, %v496_v10  ;;  %v370_v25 = vunpack.c.l.bf16 %v358_v14 }
  0x4b   : > { %2448 = vmatprep.subr.bf16.mxu0 %v2447_v40  ;;  %v480_v18 = vld [vmem:[%s3951_s1 + $0x330] sm:$0xff]  ;;  %v481_v22 = vld [vmem:[%s3951_s1 + $0x338] sm:$0xff]  ;;  %v466_v23 = vld [vmem:[%s3951_s1 + $0x2c0] sm:$0xff]  ;;  %v373_v26 = vunpack.c.h.bf16 %v359_v20  ;;  %v372_v29 = vunpack.c.l.bf16 %v359_v20  ;;  %v2461_v30 = vpack.c.bf16 %v449_v17, %v448_v13 }
  0x4c   : > { %2446 = vmatpush3.bf16.msra.mxu1 %v2445_v39  ;;  %v467_v24 = vld [vmem:[%s3951_s1 + $0x2c8] sm:$0xff]  ;;  %v498_v27 = vld [vmem:[%s3951_s1 + $0x3c0] sm:$0xff]  ;;  %v3346_v31 = vld [vmem:[%s3189_s18 + $0x10] sm:$0xff]  ;;  %v2493_v33 = vpack.c.bf16 %v481_v22, %v480_v18 }
  0x4d   : > { %2480 = vmatprep.subr.bf16.mxu1 %v2479_v44  ;;  %578 = vmatmul.mubr.f32.vlgmr.msra.gmra.mrb[0].mxu0 %v362_v48  ;;  %v499_v28 = vld [vmem:[%s3951_s1 + $0x3c8] sm:$0xff]  ;;  %v3349_v32 = vld [vmem:[%s3189_s18 + $0x18] sm:$0xff]  ;;  %v2463_v34 = vpack.c.bf16 %v467_v24, %v466_v23  ;;  %v450_v35 = vld [vmem:[%s3951_s1 + $0x240] sm:$0xff]  ;;  %v367_v38 = vunpack.c.h.bf16 %v3346_v31  ;;  %v366_v18 = vunpack.c.l.bf16 %v3346_v31 }
  0x4e   : > { %2450 = vmatpush3.bf16.msra.mxu0 %v2449_v52  ;;  %582 = vmatprep.mubr.f32.mxu0 %v371_v19  ;;  %v451_v36 = vld [vmem:[%s3951_s1 + $0x248] sm:$0xff]  ;;  %v482_v37 = vld [vmem:[%s3951_s1 + $0x340] sm:$0xff]  ;;  %v369_v39 = vunpack.c.h.bf16 %v3349_v32  ;;  %v2495_v40 = vpack.c.bf16 %v499_v28, %v498_v27  ;;  %v468_v42 = vld [vmem:[%s3951_s1 + $0x2d0] sm:$0xff]  ;;  %v368_v19 = vunpack.c.l.bf16 %v3349_v32 }
  0x4f   : > { %653 = vmatmul.mubr.f32.vlgmr.msra.gmra.mrb[0].mxu1 %v364_v51  ;;  %2452 = vmatprep.subr.bf16.mxu0 %v2451_v54  ;;  %v483_v41 = vld [vmem:[%s3951_s1 + $0x348] sm:$0xff]  ;;  %v469_v43 = vld [vmem:[%s3951_s1 + $0x2d8] sm:$0xff]  ;;  %v500_v44 = vld [vmem:[%s3951_s1 + $0x3d0] sm:$0xff]  ;;  %v2465_v46 = vpack.c.bf16 %v451_v36, %v450_v35 }
  0x50   : > { %2482 = vmatpush3.bf16.msra.mxu1 %v2481_v53  ;;  %657 = vmatprep.mubr.f32.mxu1 %v373_v26  ;;  %v501_v45 = vld [vmem:[%s3951_s1 + $0x3d8] sm:$0xff]  ;;  %v2497_v47 = vpack.c.bf16 %v483_v41, %v482_v37  ;;  %v2467_v48 = vpack.c.bf16 %v469_v43, %v468_v42  ;;  %v452_v49 = vld [vmem:[%s3951_s1 + $0x250] sm:$0xff]  ;;  %v470_v54 = vld [vmem:[%s3951_s1 + $0x2e0] sm:$0xff] }
  0x51   : > { %2484 = vmatprep.subr.bf16.mxu1 %v2483_v58  ;;  %583 = vmatmul.mubr.f32.gmra.mrb[2].mxu0 %v370_v25  ;;  %v453_v50 = vld [vmem:[%s3951_s1 + $0x258] sm:$0xff]  ;;  %v484_v51 = vld [vmem:[%s3951_s1 + $0x350] sm:$0xff]  ;;  %v2499_v52 = vpack.c.bf16 %v501_v45, %v500_v44  ;;  %v471_v55 = vld [vmem:[%s3951_s1 + $0x2e8] sm:$0xff] }
  0x52   : > { %2454 = vmatpush3.bf16.msra.mxu0 %v2453_v0  ;;  %727 = vmatprep.mubr.f32.mxu0 %v367_v38  ;;  %v485_v53 = vld [vmem:[%s3951_s1 + $0x358] sm:$0xff]  ;;  %v502_v56 = vld [vmem:[%s3951_s1 + $0x3e0] sm:$0xff]  ;;  %v503_v57 = vld [vmem:[%s3951_s1 + $0x3e8] sm:$0xff]  ;;  %v2469_v58 = vpack.c.bf16 %v453_v50, %v452_v49  ;;  %v2471_v60 = vpack.c.bf16 %v471_v55, %v470_v54 }
  0x53   : > { %2456 = vmatprep.subr.bf16.mxu0 %v2455_v2  ;;  %658 = vmatmul.mubr.f32.gmra.mrb[2].mxu1 %v372_v29  ;;  %v2501_v59 = vpack.c.bf16 %v485_v53, %v484_v51  ;;  %v454_v61 = vld [vmem:[%s3951_s1 + $0x260] sm:$0xff]  ;;  %v455_v62 = vld [vmem:[%s3951_s1 + $0x268] sm:$0xff]  ;;  %v2503_v0 = vpack.c.bf16 %v503_v57, %v502_v56  ;;  %v472_v2 = vld [vmem:[%s3951_s1 + $0x2f0] sm:$0xff] }
  0x54   : > { %2486 = vmatpush3.bf16.msra.mxu1 %v2485_v1  ;;  %802 = vmatprep.mubr.f32.mxu1 %v369_v39  ;;  %v486_v63 = vld [vmem:[%s3951_s1 + $0x360] sm:$0xff]  ;;  %v487_v1 = vld [vmem:[%s3951_s1 + $0x368] sm:$0xff]  ;;  %v473_v3 = vld [vmem:[%s3951_s1 + $0x2f8] sm:$0xff] }
  0x55   : > { %2488 = vmatprep.subr.bf16.mxu1 %v2487_v6  ;;  %v504_v4 = vld [vmem:[%s3951_s1 + $0x3f0] sm:$0xff]  ;;  %v505_v5 = vld [vmem:[%s3951_s1 + $0x3f8] sm:$0xff]  ;;  %v2473_v6 = vpack.c.bf16 %v455_v62, %v454_v61  ;;  %v2505_v7 = vpack.c.bf16 %v487_v1, %v486_v63  ;;  %v2475_v8 = vpack.c.bf16 %v473_v3, %v472_v2  ;;  %v814_v24 = vld [vmem:[#allocation2 + $0x8] sm:$0xff] }
  0x56   : > { %2458 = vmatpush3.bf16.msra.mxu0 %v2457_v12  ;;  %v456_v9 = vld [vmem:[%s3951_s1 + $0x270] sm:$0xff]  ;;  %v457_v10 = vld [vmem:[%s3951_s1 + $0x278] sm:$0xff]  ;;  %v2507_v11 = vpack.c.bf16 %v505_v5, %v504_v4  ;;  %v822_v25 = vld [vmem:[#allocation2 + $0x48] sm:$0xff] }
  0x57   : > { %2460 = vmatprep.subr.bf16.mxu0 %v2459_v16  ;;  %v488_v12 = vld [vmem:[%s3951_s1 + $0x370] sm:$0xff]  ;;  %v489_v13 = vld [vmem:[%s3951_s1 + $0x378] sm:$0xff]  ;;  %v2477_v14 = vpack.c.bf16 %v457_v10, %v456_v9  ;;  %v2511_v27 = vpack.c.bf16 %v822_v25, %v814_v24  ;;  %v813_v29 = vld [vmem:[#allocation2] sm:$0xff] }
  0x58   : > { %2490 = vmatpush3.bf16.msra.mxu1 %v2489_v15  ;;  %v2509_v15 = vpack.c.bf16 %v489_v13, %v488_v12  ;;  %v360_v16 = vld [vmem:[%s3189_s18 + $0x30] sm:$0xff]  ;;  %v361_v17 = vld [vmem:[%s3189_s18 + $0x38] sm:$0xff]  ;;  %v830_v35 = vld [vmem:[#allocation2 + $0x88] sm:$0xff] }
  0x59   : > { %2492 = vmatprep.subr.bf16.mxu1 %v2491_v21  ;;  %v375_v20 = vunpack.c.h.bf16 %v360_v16  ;;  %v377_v21 = vunpack.c.h.bf16 %v361_v17  ;;  %v374_v22 = vunpack.c.l.bf16 %v360_v16  ;;  %v376_v23 = vunpack.c.l.bf16 %v361_v17  ;;  %v816_v26 = vld [vmem:[#allocation2 + $0x18] sm:$0xff]  ;;  %v838_v37 = vld [vmem:[#allocation2 + $0xc8] sm:$0xff]  ;;  %v829_v42 = vld [vmem:[#allocation2 + $0x80] sm:$0xff] }
  0x5a   : > { %2462 = vmatpush3.bf16.msra.mxu0 %v2461_v30  ;;  %v824_v28 = vld [vmem:[#allocation2 + $0x58] sm:$0xff]  ;;  %v821_v30 = vld [vmem:[#allocation2 + $0x40] sm:$0xff]  ;;  %v831_v44 = vld [vmem:[#allocation2 + $0x90] sm:$0xff] }
  0x5b   : > { %2464 = vmatprep.subr.bf16.mxu0 %v2463_v34  ;;  %v2543_v31 = vpack.c.bf16 %v824_v28, %v816_v26  ;;  %v2513_v32 = vpack.c.bf16 %v821_v30, %v813_v29  ;;  %v823_v34 = vld [vmem:[#allocation2 + $0x50] sm:$0xff]  ;;  %v832_v38 = vld [vmem:[#allocation2 + $0x98] sm:$0xff]  ;;  %v837_v43 = vld [vmem:[#allocation2 + $0xc0] sm:$0xff] }
  0x5c   : > { %2494 = vmatpush3.bf16.msra.mxu1 %v2493_v33  ;;  %v815_v33 = vld [vmem:[#allocation2 + $0x10] sm:$0xff]  ;;  %v840_v39 = vld [vmem:[#allocation2 + $0xd8] sm:$0xff]  ;;  %v2517_v45 = vpack.c.bf16 %v837_v43, %v829_v42  ;;  %v845_v53 = vld [vmem:[#allocation2 + $0x100] sm:$0xff] }
  0x5d   : > { %2496 = vmatprep.subr.bf16.mxu1 %v2495_v40  ;;  %v2545_v36 = vpack.c.bf16 %v823_v34, %v815_v33  ;;  %v2515_v40 = vpack.c.bf16 %v838_v37, %v830_v35  ;;  %v2547_v41 = vpack.c.bf16 %v840_v39, %v832_v38  ;;  %v848_v51 = vld [vmem:[#allocation2 + $0x118] sm:$0xff]  ;;  %v853_v55 = vld [vmem:[#allocation2 + $0x140] sm:$0xff]  ;;  %v847_v56 = vld [vmem:[#allocation2 + $0x110] sm:$0xff] }
  0x5e   : > { %2466 = vmatpush3.bf16.msra.mxu0 %v2465_v46  ;;  %v839_v46 = vld [vmem:[#allocation2 + $0xd0] sm:$0xff]  ;;  %v864_v61 = vld [vmem:[#allocation2 + $0x198] sm:$0xff]  ;;  %v861_v1 = vld [vmem:[#allocation2 + $0x180] sm:$0xff] }
  0x5f   : > { %2468 = vmatprep.subr.bf16.mxu0 %v2467_v48  ;;  %v854_v48 = vld [vmem:[#allocation2 + $0x148] sm:$0xff]  ;;  %v2549_v49 = vpack.c.bf16 %v839_v46, %v831_v44  ;;  %v855_v57 = vld [vmem:[#allocation2 + $0x150] sm:$0xff]  ;;  %v869_v2 = vld [vmem:[#allocation2 + $0x1c0] sm:$0xff] }
  0x60   : > { %2498 = vmatpush3.bf16.msra.mxu1 %v2497_v47  ;;  %v846_v47 = vld [vmem:[#allocation2 + $0x108] sm:$0xff]  ;;  %v2553_v62 = vpack.c.bf16 %v855_v57, %v847_v56  ;;  %v863_v4 = vld [vmem:[#allocation2 + $0x190] sm:$0xff]  ;;  %v888_v9 = vld [vmem:[#allocation2 + $0x258] sm:$0xff]  ;;  %v2525_v10 = vpack.c.bf16 %v869_v2, %v861_v1 }
  0x61   : > { %2500 = vmatprep.subr.bf16.mxu1 %v2499_v52  ;;  %v2519_v50 = vpack.c.bf16 %v854_v48, %v846_v47  ;;  %v856_v52 = vld [vmem:[#allocation2 + $0x158] sm:$0xff]  ;;  %v871_v5 = vld [vmem:[#allocation2 + $0x1d0] sm:$0xff]  ;;  %v877_v13 = vld [vmem:[#allocation2 + $0x200] sm:$0xff] }
  0x62   : > { %2470 = vmatpush3.bf16.msra.mxu0 %v2469_v58  ;;  %v2551_v54 = vpack.c.bf16 %v856_v52, %v848_v51  ;;  %v2521_v58 = vpack.c.bf16 %v853_v55, %v845_v53  ;;  %v887_v17 = vld [vmem:[#allocation2 + $0x250] sm:$0xff]  ;;  %v893_v25 = vld [vmem:[#allocation2 + $0x280] sm:$0xff]  ;;  %v910_v30 = vld [vmem:[#allocation2 + $0x308] sm:$0xff] }
  0x63   : > { %2472 = vmatprep.subr.bf16.mxu0 %v2471_v60  ;;  %v870_v60 = vld [vmem:[#allocation2 + $0x1c8] sm:$0xff]  ;;  %v901_v26 = vld [vmem:[#allocation2 + $0x2c0] sm:$0xff]  ;;  %v903_v29 = vld [vmem:[#allocation2 + $0x2d0] sm:$0xff] }
  0x64   : > { %2502 = vmatpush3.bf16.msra.mxu1 %v2501_v59  ;;  %v862_v59 = vld [vmem:[#allocation2 + $0x188] sm:$0xff]  ;;  %v920_v33 = vld [vmem:[#allocation2 + $0x358] sm:$0xff]  ;;  %v2533_v34 = vpack.c.bf16 %v901_v26, %v893_v25  ;;  %v909_v38 = vld [vmem:[#allocation2 + $0x300] sm:$0xff] }
  0x65   : > { %2504 = vmatprep.subr.bf16.mxu1 %v2503_v0  ;;  %v2523_v63 = vpack.c.bf16 %v870_v60, %v862_v59  ;;  %v872_v0 = vld [vmem:[#allocation2 + $0x1d8] sm:$0xff]  ;;  %v917_v39 = vld [vmem:[#allocation2 + $0x340] sm:$0xff]  ;;  %v919_v42 = vld [vmem:[#allocation2 + $0x350] sm:$0xff] }
  0x66   : > { %2474 = vmatpush3.bf16.msra.mxu0 %v2473_v6  ;;  %v2555_v3 = vpack.c.bf16 %v872_v0, %v864_v61  ;;  %v878_v6 = vld [vmem:[#allocation2 + $0x208] sm:$0xff]  ;;  %v928_v46 = vld [vmem:[#allocation2 + $0x398] sm:$0xff]  ;;  %v927_v53 = vld [vmem:[#allocation2 + $0x390] sm:$0xff] }
  0x67   : > { %2476 = vmatprep.subr.bf16.mxu0 %v2475_v8  ;;  %v880_v8 = vld [vmem:[#allocation2 + $0x218] sm:$0xff]  ;;  %v926_v44 = vld [vmem:[#allocation2 + $0x388] sm:$0xff]  ;;  %v2020_v0 = vld [vmem:[%s3952_s2] ss:$0 sm:$0xff] }
  0x68   : > { %2506 = vmatpush3.bf16.msra.mxu1 %v2505_v7  ;;  %v886_v7 = vld [vmem:[#allocation2 + $0x248] sm:$0xff]  ;;  %v2559_v16 = vpack.c.bf16 %v888_v9, %v880_v8  ;;  %v936_v48 = vld [vmem:[#allocation2 + $0x3d8] sm:$0xff] }
  0x69   : > { %2508 = vmatprep.subr.bf16.mxu1 %v2507_v11  ;;  %v2557_v11 = vpack.c.bf16 %v871_v5, %v863_v4  ;;  %v2527_v12 = vpack.c.bf16 %v886_v7, %v878_v6  ;;  %v2571_v51 = vpack.c.bf16 %v936_v48, %v928_v46  ;;  %v818_v56 = vld [vmem:[#allocation2 + $0x28] sm:$0xff]  ;;  %v828_v60 = vld [vmem:[#allocation2 + $0x78] sm:$0xff] }
  0x6a   : > { %2478 = vmatpush3.bf16.msra.mxu0 %v2477_v14  ;;  %v885_v14 = vld [vmem:[#allocation2 + $0x240] sm:$0xff]  ;;  %v826_v57 = vld [vmem:[#allocation2 + $0x68] sm:$0xff]  ;;  %v852_v48 = vld [vmem:[#allocation2 + $0x138] sm:$0xff] }
  0x6b   : > { %2512 = vmatprep.subr.bf16.mxu0 %v2511_v27  ;;  %v895_v27 = vld [vmem:[#allocation2 + $0x290] sm:$0xff]  ;;  %v2575_v59 = vpack.c.bf16 %v826_v57, %v818_v56  ;;  %v834_v26 = vld [vmem:[#allocation2 + $0xa8] sm:$0xff] }
  0x6c   : > { %2510 = vmatpush3.bf16.msra.mxu1 %v2509_v15  ;;  %v879_v15 = vld [vmem:[#allocation2 + $0x210] sm:$0xff]  ;;  %v2565_v35 = vpack.c.bf16 %v903_v29, %v895_v27  ;;  %v842_v29 = vld [vmem:[#allocation2 + $0xe8] sm:$0xff] }
  0x6d   : > { %728 = vmatmul.mubr.f32.vlgmr.msra.gmra.mrb[4].mxu0 %v366_v18  ;;  %2544 = vmatprep.subr.bf16.mxu1 %v2543_v31  ;;  %v894_v18 = vld [vmem:[#allocation2 + $0x288] sm:$0xff] }
  0x6e   : > { %732 = vmatprep.mubr.f32.mxu0 %v375_v20  ;;  %2514 = vmatpush1.bf16.msra.mxu0 %v2513_v32  ;;  %v896_v20 = vld [vmem:[#allocation2 + $0x298] sm:$0xff]  ;;  %v918_v31 = vld [vmem:[#allocation2 + $0x348] sm:$0xff] }
  0x6f   : > { %803 = vmatmul.mubr.f32.vlgmr.msra.gmra.mrb[4].mxu1 %v368_v19  ;;  %2516 = vmatprep.subr.bf16.mxu0 %v2515_v40  ;;  %v902_v19 = vld [vmem:[#allocation2 + $0x2c8] sm:$0xff]  ;;  %v912_v32 = vld [vmem:[#allocation2 + $0x318] sm:$0xff]  ;;  %v911_v40 = vld [vmem:[#allocation2 + $0x310] sm:$0xff] }
  0x70   : > { %807 = vmatprep.mubr.f32.mxu1 %v377_v21  ;;  %2546 = vmatpush1.bf16.msra.mxu1 %v2545_v36  ;;  %v904_v21 = vld [vmem:[#allocation2 + $0x2d8] sm:$0xff]  ;;  %v2531_v24 = vpack.c.bf16 %v902_v19, %v894_v18  ;;  %v2535_v36 = vpack.c.bf16 %v918_v31, %v910_v30  ;;  %v2567_v37 = vpack.c.bf16 %v920_v33, %v912_v32  ;;  %v817_v19 = vld [vmem:[#allocation2 + $0x20] sm:$0xff] }
  0x71   : > { %733 = vmatmul.mubr.f32.gmra.mrb[6].mxu0 %v374_v22  ;;  %2548 = vmatprep.subr.bf16.mxu1 %v2547_v41  ;;  %v2529_v22 = vpack.c.bf16 %v885_v14, %v877_v13  ;;  %v2563_v28 = vpack.c.bf16 %v904_v21, %v896_v20  ;;  %v2537_v41 = vpack.c.bf16 %v917_v39, %v909_v38  ;;  %v836_v30 = vld [vmem:[#allocation2 + $0xb8] sm:$0xff] }
  0x72   : > { %2518 = vmatpush1.bf16.msra.mxu0 %v2517_v45  ;;  %v2569_v43 = vpack.c.bf16 %v919_v42, %v911_v40  ;;  %v934_v45 = vld [vmem:[#allocation2 + $0x3c8] sm:$0xff]  ;;  %v844_v31 = vld [vmem:[#allocation2 + $0xf8] sm:$0xff]  ;;  %v843_v42 = vld [vmem:[#allocation2 + $0xf0] sm:$0xff] }
  0x73   : > { %808 = vmatmul.mubr.f32.gmra.mrb[6].mxu1 %v376_v23  ;;  %2520 = vmatprep.subr.bf16.mxu0 %v2519_v50  ;;  %v2561_v23 = vpack.c.bf16 %v887_v17, %v879_v15  ;;  %v2539_v47 = vpack.c.bf16 %v934_v45, %v926_v44  ;;  %v933_v50 = vld [vmem:[#allocation2 + $0x3c0] sm:$0xff]  ;;  %v2579_v45 = vpack.c.bf16 %v842_v29, %v834_v26 }
  0x74   : > { %2550 = vmatpush1.bf16.msra.mxu1 %v2549_v49  ;;  %v925_v49 = vld [vmem:[#allocation2 + $0x380] sm:$0xff]  ;;  %v2611_v46 = vpack.c.bf16 %v844_v31, %v836_v30  ;;  %v899_v31 = vld [vmem:[#allocation2 + $0x2b0] sm:$0xff] }
  0x75   : > { %2552 = vmatprep.subr.bf16.mxu1 %v2551_v54  ;;  %v2541_v52 = vpack.c.bf16 %v933_v50, %v925_v49  ;;  %v935_v54 = vld [vmem:[#allocation2 + $0x3d0] sm:$0xff]  ;;  %v860_v49 = vld [vmem:[#allocation2 + $0x178] sm:$0xff] }
  0x76   : > { %2522 = vmatpush1.bf16.msra.mxu0 %v2521_v58  ;;  %v2573_v55 = vpack.c.bf16 %v935_v54, %v927_v53  ;;  %v820_v58 = vld [vmem:[#allocation2 + $0x38] sm:$0xff]  ;;  %v849_v53 = vld [vmem:[#allocation2 + $0x120] sm:$0xff]  ;;  %v2615_v57 = vpack.c.bf16 %v860_v49, %v852_v48 }
  0x77   : > { %2524 = vmatprep.subr.bf16.mxu0 %v2523_v63  ;;  %v2607_v61 = vpack.c.bf16 %v828_v60, %v820_v58  ;;  %v857_v54 = vld [vmem:[#allocation2 + $0x160] sm:$0xff]  ;;  %v851_v58 = vld [vmem:[#allocation2 + $0x130] sm:$0xff]  ;;  %v866_v60 = vld [vmem:[#allocation2 + $0x1a8] sm:$0xff] }
  0x78   : > { %2554 = vmatpush1.bf16.msra.mxu1 %v2553_v62  ;;  %v2919_v62 = vmov 0.0   ;;  %v932_v48 = vld [vmem:[#allocation2 + $0x3b8] sm:$0xff] }
  0x79   : > { %2556 = vmatprep.subr.bf16.mxu1 %v2555_v3  ;;  %1047 = vmatprep.mubr.f32.mxu0 %v2919_v62  ;;  %v940_v49 = vld [vmem:[#allocation2 + $0x3f8] sm:$0xff] }
  0x7a   : > { %2526 = vmatpush1.bf16.msra.mxu0 %v2525_v10  ;;  %1124 = vmatprep.mubr.f32.mxu1 %v2919_v62 }
  0x7b   : > { %2528 = vmatprep.subr.bf16.mxu0 %v2527_v12 }
  0x7c   : > { %2558 = vmatpush1.bf16.msra.mxu1 %v2557_v11 }
  0x7d   : > { %2560 = vmatprep.subr.bf16.mxu1 %v2559_v16 }
  0x7e   : > { %2530 = vmatpush1.bf16.msra.mxu0 %v2529_v22  ;;  %v825_v22 = vld [vmem:[#allocation2 + $0x60] sm:$0xff] }
  0x7f   : > { %2532 = vmatprep.subr.bf16.mxu0 %v2531_v24  ;;  %v827_v24 = vld [vmem:[#allocation2 + $0x70] sm:$0xff] }
  0x80   : > { %2562 = vmatpush1.bf16.msra.mxu1 %v2561_v23  ;;  %v819_v23 = vld [vmem:[#allocation2 + $0x30] sm:$0xff] }
  0x81   : > { %2564 = vmatprep.subr.bf16.mxu1 %v2563_v28 }
  0x82   : > { %2534 = vmatpush1.bf16.msra.mxu0 %v2533_v34  ;;  %v2577_v34 = vpack.c.bf16 %v825_v22, %v817_v19  ;;  %v883_v19 = vld [vmem:[#allocation2 + $0x230] sm:$0xff]  ;;  %v906_v22 = vld [vmem:[#allocation2 + $0x2e8] sm:$0xff] }
  0x83   : > { %2536 = vmatprep.subr.bf16.mxu0 %v2535_v36  ;;  %v833_v36 = vld [vmem:[#allocation2 + $0xa0] sm:$0xff] }
  0x84   : > { %2566 = vmatpush1.bf16.msra.mxu1 %v2565_v35  ;;  %v2609_v35 = vpack.c.bf16 %v827_v24, %v819_v23  ;;  %v900_v23 = vld [vmem:[#allocation2 + $0x2b8] sm:$0xff] }
  0x85   : > { %2568 = vmatprep.subr.bf16.mxu1 %v2567_v37  ;;  %v841_v37 = vld [vmem:[#allocation2 + $0xe0] sm:$0xff]  ;;  %v908_v24 = vld [vmem:[#allocation2 + $0x2f8] sm:$0xff] }
  0x86   : > { %2538 = vmatpush1.bf16.msra.mxu0 %v2537_v41  ;;  %v835_v41 = vld [vmem:[#allocation2 + $0xb0] sm:$0xff]  ;;  %v2627_v30 = vpack.c.bf16 %v908_v24, %v900_v23  ;;  %v1360_v23 = vld [vmem:[%s3955_s5 + $0x1a8] sm:$0xff] }
  0x87   : > { %2540 = vmatprep.subr.bf16.mxu0 %v2539_v47  ;;  %v858_v47 = vld [vmem:[#allocation2 + $0x168] sm:$0xff] }
  0x88   : > { %2570 = vmatpush1.bf16.msra.mxu1 %v2569_v43  ;;  %v850_v43 = vld [vmem:[#allocation2 + $0x128] sm:$0xff] }
  0x89   : > { %2572 = vmatprep.subr.bf16.mxu1 %v2571_v51  ;;  %v2581_v51 = vpack.c.bf16 %v841_v37, %v833_v36  ;;  %v2583_v56 = vpack.c.bf16 %v858_v47, %v850_v43  ;;  %v924_v36 = vld [vmem:[#allocation2 + $0x378] sm:$0xff]  ;;  %v938_v47 = vld [vmem:[#allocation2 + $0x3e8] sm:$0xff] }
  0x8a   : > { %2542 = vmatpush1.bf16.msra.mxu0 %v2541_v52  ;;  %v2613_v52 = vpack.c.bf16 %v843_v42, %v835_v41  ;;  %v921_v41 = vld [vmem:[#allocation2 + $0x360] sm:$0xff] }
  0x8b   : > { %2576 = vmatprep.subr.bf16.mxu0 %v2575_v59  ;;  %v859_v59 = vld [vmem:[#allocation2 + $0x170] sm:$0xff] }
  0x8c   : > { %2574 = vmatpush1.bf16.msra.mxu1 %v2573_v55 }
  0x8d   : > { %2608 = vmatprep.subr.bf16.mxu1 %v2607_v61  ;;  %v874_v61 = vld [vmem:[#allocation2 + $0x1e8] sm:$0xff] }
 0x120   : > { %v2058_v63 = vpop.f32.mrb[0].mxu0 }
 0x121   : > { %v2059_v1 = vpop.f32.mrb[1].mxu0 }
 0x122   : > { %v2096_v2 = vpop.f32.mrb[0].mxu1  ;;  %v2060_v3 = vadd.f32 %v2059_v1, %v2058_v63  ;;  %v868_v63 = vld [vmem:[#allocation2 + $0x1b8] sm:$0xff]  ;;  %v2585_v1 = vpack.c.bf16 %v857_v54, %v849_v53  ;;  %v937_v53 = vld [vmem:[#allocation2 + $0x3e0] sm:$0xff] }
 0x123   : > { %v2097_v4 = vpop.f32.mrb[1].mxu1 }
 0x124   : > { %v2098_v5 = vadd.f32 %v2097_v4, %v2096_v2  ;;  %v580_v6 = vadd.f32 %v2060_v3, %v2020_v0  ;;  %v2061_v8 = vpop.f32.mrb[2].mxu0  ;;  %v2617_v2 = vpack.c.bf16 %v859_v59, %v851_v58  ;;  %v865_v3 = vld [vmem:[#allocation2 + $0x1a0] sm:$0xff]  ;;  %v939_v58 = vld [vmem:[#allocation2 + $0x3f0] sm:$0xff] }
 0x125   : > { %v2062_v9 = vpop.f32.mrb[3].mxu0  ;;  %v873_v4 = vld [vmem:[#allocation2 + $0x1e0] sm:$0xff] }
 0x126   : > { %v655_v7 = vadd.f32 %v2098_v5, %v580_v6  ;;  %v2099_v10 = vpop.f32.mrb[2].mxu1  ;;  %v2063_v11 = vadd.f32 %v2062_v9, %v2061_v8  ;;  %v2587_v5 = vpack.c.bf16 %v874_v61, %v866_v60  ;;  %v875_v8 = vld [vmem:[#allocation2 + $0x1f0] sm:$0xff]  ;;  %v882_v9 = vld [vmem:[#allocation2 + $0x228] sm:$0xff]  ;;  %v1323_v59 = vld [vmem:[%s3955_s5 + $0x80] sm:$0xff] }
 0x127   : > { %v2100_v12 = vpop.f32.mrb[3].mxu1  ;;  %v1324_v60 = vld [vmem:[%s3955_s5 + $0x88] sm:$0xff]  ;;  %v1355_v61 = vld [vmem:[%s3955_s5 + $0x180] sm:$0xff] }
 0x128   : > { %v2101_v13 = vadd.f32 %v2100_v12, %v2099_v10  ;;  %v585_v14 = vadd.f32 %v2063_v11, %v2020_v0  ;;  %v876_v0 = vld [vmem:[#allocation2 + $0x1f8] sm:$0xff]  ;;  %v890_v10 = vld [vmem:[#allocation2 + $0x268] sm:$0xff] }
 0x129   : > { %v2619_v6 = vpack.c.bf16 %v876_v0, %v868_v63  ;;  %v884_v11 = vld [vmem:[#allocation2 + $0x238] sm:$0xff]  ;;  %v1356_v63 = vld [vmem:[%s3955_s5 + $0x188] sm:$0xff] }
 0x12a   : > { %v660_v15 = vadd.f32 %v2101_v13, %v585_v14  ;;  %v892_v12 = vld [vmem:[#allocation2 + $0x278] sm:$0xff]  ;;  %v2589_v13 = vpack.c.bf16 %v873_v4, %v865_v3  ;;  %v2671_v3 = vpack.c.bf16 %v1356_v63, %v1355_v61  ;;  %v1307_v4 = vld [vmem:[%s3955_s5] sm:$0xff]  ;;  %v1365_v61 = vld [vmem:[%s3955_s5 + $0x1d0] sm:$0xff] }
 0x140   : > { %v2134_v16 = vpop.f32.mrb[4].mxu0 }
 0x141   : > { %v2135_v17 = vpop.f32.mrb[5].mxu0 }
 0x142   : > { %v2172_v18 = vpop.f32.mrb[4].mxu1  ;;  %v2136_v20 = vadd.f32 %v2135_v17, %v2134_v16  ;;  %v889_v16 = vld [vmem:[#allocation2 + $0x260] sm:$0xff]  ;;  %v2591_v17 = vpack.c.bf16 %v890_v10, %v882_v9  ;;  %v1326_v9 = vld [vmem:[%s3955_s5 + $0x98] sm:$0xff]  ;;  %v1357_v10 = vld [vmem:[%s3955_s5 + $0x190] sm:$0xff] }
 0x143   : > { %v2173_v21 = vpop.f32.mrb[5].mxu1 }
 0x144   : > { %v2174_v25 = vadd.f32 %v2173_v21, %v2172_v18  ;;  %v730_v27 = vadd.f32 %v2136_v20, %v655_v7  ;;  %v2137_v28 = vpop.f32.mrb[6].mxu0  ;;  %v867_v7 = vld [vmem:[#allocation2 + $0x1b0] sm:$0xff]  ;;  %v2623_v18 = vpack.c.bf16 %v892_v12, %v884_v11  ;;  %v898_v21 = vld [vmem:[#allocation2 + $0x2a8] sm:$0xff]  ;;  %v1358_v11 = vld [vmem:[%s3955_s5 + $0x198] sm:$0xff] }
 0x145   : > { %v2138_v32 = vpop.f32.mrb[7].mxu0  ;;  %v2621_v14 = vpack.c.bf16 %v875_v8, %v867_v7  ;;  %v891_v20 = vld [vmem:[#allocation2 + $0x270] sm:$0xff]  ;;  %v2595_v29 = vpack.c.bf16 %v906_v22, %v898_v21  ;;  %v1340_v7 = vld [vmem:[%s3955_s5 + $0x108] sm:$0xff]  ;;  %v1359_v22 = vld [vmem:[%s3955_s5 + $0x1a0] sm:$0xff] }
 0x146   : > { %v2175_v33 = vpop.f32.mrb[6].mxu1  ;;  %v3446_v38 = vadd.f32 %v2174_v25, %v730_v27  ;;  %v2139_v39 = vadd.f32 %v2138_v32, %v2137_v28  ;;  %v2625_v26 = vpack.c.bf16 %v891_v20, %v883_v19  ;;  %v897_v27 = vld [vmem:[#allocation2 + $0x2a0] sm:$0xff]  ;;  %v907_v32 = vld [vmem:[#allocation2 + $0x2f0] sm:$0xff]  ;;  %v1342_v19 = vld [vmem:[%s3955_s5 + $0x118] sm:$0xff] }
 0x147   : > { %v2176_v40 = vpop.f32.mrb[7].mxu1  ;;  %v905_v28 = vld [vmem:[#allocation2 + $0x2e0] sm:$0xff]  ;;  %v1325_v8 = vld [vmem:[%s3955_s5 + $0x90] sm:$0xff]  ;;  %v1328_v21 = vld [vmem:[%s3955_s5 + $0xa8] sm:$0xff] }
 0x148   : > { %v2177_v44 = vadd.f32 %v2176_v40, %v2175_v33  ;;  %v735_v50 = vadd.f32 %v2139_v39, %v660_v15  ;;  %1048 = vmatmul.mubr.f32.vlgmr.msra.gmra.mrb[8].mxu0 %v3446_v38  ;;  %1125 = vmatmul.mubr.f32.vlgmr.msra.gmra.mrb[8].mxu1 %v3446_v38  ;;  %v881_v15 = vld [vmem:[#allocation2 + $0x220] sm:$0xff]  ;;  %v914_v33 = vld [vmem:[#allocation2 + $0x328] sm:$0xff]  ;;  %v2597_v37 = vpack.c.bf16 %v905_v28, %v897_v27 }
 0x149   : > { %2578 = vmatpush1.bf16.msra.mxu0 %v2577_v34  ;;  %2610 = vmatpush1.bf16.msra.mxu1 %v2609_v35  ;;  %v2593_v25 = vpack.c.bf16 %v889_v16, %v881_v15  ;;  %v922_v34 = vld [vmem:[#allocation2 + $0x368] sm:$0xff]  ;;  %v916_v35 = vld [vmem:[#allocation2 + $0x338] sm:$0xff]  ;;  %v2629_v39 = vpack.c.bf16 %v907_v32, %v899_v31  ;;  %v913_v40 = vld [vmem:[#allocation2 + $0x320] sm:$0xff]  ;;  %v2643_v16 = vpack.c.bf16 %v1326_v9, %v1325_v8 }
 0x14a   : > { %v3450_v55 = vadd.f32 %v2177_v44, %v735_v50  ;;  %1053 = vmatprep.mubr.f32.mxu0 %v2919_v62  ;;  %1130 = vmatprep.mubr.f32.mxu1 %v2919_v62  ;;  %v2599_v42 = vpack.c.bf16 %v922_v34, %v914_v33  ;;  %v2631_v43 = vpack.c.bf16 %v924_v36, %v916_v35  ;;  %v915_v44 = vld [vmem:[#allocation2 + $0x330] sm:$0xff]  ;;  %v1310_v15 = vld [vmem:[%s3955_s5 + $0x18] sm:$0xff]  ;;  %v1327_v20 = vld [vmem:[%s3955_s5 + $0xa0] sm:$0xff] }
 0x14b   : > { %2580 = vmatprep.subr.bf16.mxu0 %v2579_v45  ;;  %2612 = vmatprep.subr.bf16.mxu1 %v2611_v46  ;;  %v923_v45 = vld [vmem:[#allocation2 + $0x370] sm:$0xff]  ;;  %v930_v46 = vld [vmem:[#allocation2 + $0x3a8] sm:$0xff]  ;;  %v2601_v50 = vpack.c.bf16 %v921_v41, %v913_v40  ;;  %v2647_v28 = vpack.c.bf16 %v1328_v21, %v1327_v20  ;;  %v1330_v32 = vld [vmem:[%s3955_s5 + $0xb8] sm:$0xff] }
 0x14c   : > { %1054 = vmatmul.mubr.f32.gmra.mrb[10].mxu0 %v3450_v55  ;;  %1131 = vmatmul.mubr.f32.gmra.mrb[10].mxu1 %v3450_v55  ;;  %v2603_v54 = vpack.c.bf16 %v938_v47, %v930_v46  ;;  %v1312_v27 = vld [vmem:[%s3955_s5 + $0x28] sm:$0xff]  ;;  %v1329_v31 = vld [vmem:[%s3955_s5 + $0xb0] sm:$0xff]  ;;  %v1362_v34 = vld [vmem:[%s3955_s5 + $0x1b8] sm:$0xff] }
 0x14d   : > { %2582 = vmatpush1.bf16.msra.mxu0 %v2581_v51  ;;  %2614 = vmatpush1.bf16.msra.mxu1 %v2613_v52  ;;  %v2633_v51 = vpack.c.bf16 %v923_v45, %v915_v44  ;;  %v929_v52 = vld [vmem:[#allocation2 + $0x3a0] sm:$0xff]  ;;  %v1361_v33 = vld [vmem:[%s3955_s5 + $0x1b0] sm:$0xff]  ;;  %v2651_v40 = vpack.c.bf16 %v1330_v32, %v1329_v31  ;;  %v1332_v45 = vld [vmem:[%s3955_s5 + $0xc8] sm:$0xff] }
 0x14e   : > { %2584 = vmatprep.subr.bf16.mxu0 %v2583_v56  ;;  %2616 = vmatprep.subr.bf16.mxu1 %v2615_v57  ;;  %v2635_v56 = vpack.c.bf16 %v940_v49, %v932_v48  ;;  %v931_v57 = vld [vmem:[#allocation2 + $0x3b0] sm:$0xff]  ;;  %v2605_v0 = vpack.c.bf16 %v937_v53, %v929_v52  ;;  %v2683_v41 = vpack.c.bf16 %v1362_v34, %v1361_v33  ;;  %v1331_v44 = vld [vmem:[%s3955_s5 + $0xc0] sm:$0xff]  ;;  %v1364_v47 = vld [vmem:[%s3955_s5 + $0x1c8] sm:$0xff] }
 0x14f   : > { %1201 = vmatprep.mubr.f32.mxu0 %v2919_v62  ;;  %1278 = vmatprep.mubr.f32.mxu1 %v2919_v62  ;;  %v1363_v46 = vld [vmem:[%s3955_s5 + $0x1c0] sm:$0xff]  ;;  %v1316_v53 = vld [vmem:[%s3955_s5 + $0x48] sm:$0xff]  ;;  %v1337_v20 = vld [vmem:[%s3955_s5 + $0xf0] sm:$0xff] }
 0x150   : > { %v1315_v52 = vld [vmem:[%s3955_s5 + $0x40] sm:$0xff]  ;;  %v1336_v9 = vld [vmem:[%s3955_s5 + $0xe8] sm:$0xff]  ;;  %v1338_v21 = vld [vmem:[%s3955_s5 + $0xf8] sm:$0xff] }
 0x151   : > { %2586 = vmatpush1.bf16.msra.mxu0 %v2585_v1  ;;  %2618 = vmatpush1.bf16.msra.mxu1 %v2617_v2  ;;  %v2637_v1 = vpack.c.bf16 %v939_v58, %v931_v57  ;;  %v2639_v2 = vpack.c.bf16 %v1324_v60, %v1323_v59  ;;  %v1348_v57 = vld [vmem:[%s3955_s5 + $0x148] sm:$0xff]  ;;  %v1333_v59 = vld [vmem:[%s3955_s5 + $0xd0] sm:$0xff]  ;;  %v1334_v60 = vld [vmem:[%s3955_s5 + $0xd8] sm:$0xff] }
 0x152   : > { %2588 = vmatprep.subr.bf16.mxu0 %v2587_v5  ;;  %2620 = vmatprep.subr.bf16.mxu1 %v2619_v6  ;;  %v1308_v5 = vld [vmem:[%s3955_s5 + $0x8] sm:$0xff]  ;;  %v1339_v6 = vld [vmem:[%s3955_s5 + $0x100] sm:$0xff]  ;;  %v2659_v63 = vpack.c.bf16 %v1334_v60, %v1333_v59 }
 0x153   : > { %v2641_v12 = vpack.c.bf16 %v1308_v5, %v1307_v4  ;;  %v1349_v5 = vld [vmem:[%s3955_s5 + $0x150] sm:$0xff]  ;;  %v1335_v8 = vld [vmem:[%s3955_s5 + $0xe0] sm:$0xff]  ;;  %v1388_v32 = vld [vmem:[%s3955_s5 + $0x288] sm:$0xff] }
 0x154   : > { %v1387_v31 = vld [vmem:[%s3955_s5 + $0x280] sm:$0xff] }
 0x155   : > { %2590 = vmatpush1.bf16.msra.mxu0 %v2589_v13  ;;  %2622 = vmatpush1.bf16.msra.mxu1 %v2621_v14  ;;  %v2673_v13 = vpack.c.bf16 %v1340_v7, %v1339_v6  ;;  %v1309_v14 = vld [vmem:[%s3955_s5 + $0x10] sm:$0xff]  ;;  %v1350_v6 = vld [vmem:[%s3955_s5 + $0x158] sm:$0xff]  ;;  %v1419_v33 = vld [vmem:[%s3955_s5 + $0x380] sm:$0xff]  ;;  %v2703_v34 = vpack.c.bf16 %v1388_v32, %v1387_v31 }
 0x156   : > { %2592 = vmatprep.subr.bf16.mxu0 %v2591_v17  ;;  %2624 = vmatprep.subr.bf16.mxu1 %v2623_v18  ;;  %v2675_v17 = vpack.c.bf16 %v1358_v11, %v1357_v10  ;;  %v1341_v18 = vld [vmem:[%s3955_s5 + $0x110] sm:$0xff]  ;;  %v2645_v24 = vpack.c.bf16 %v1310_v15, %v1309_v14  ;;  %v2693_v7 = vpack.c.bf16 %v1350_v6, %v1349_v5  ;;  %v1367_v10 = vld [vmem:[%s3955_s5 + $0x1e0] sm:$0xff]  ;;  %v1320_v14 = vld [vmem:[%s3955_s5 + $0x68] sm:$0xff] }
 0x157   : > { %v2663_v11 = vpack.c.bf16 %v1336_v9, %v1335_v8  ;;  %v1403_v5 = vld [vmem:[%s3955_s5 + $0x300] sm:$0xff]  ;;  %v1404_v6 = vld [vmem:[%s3955_s5 + $0x308] sm:$0xff]  ;;  %v1390_v8 = vld [vmem:[%s3955_s5 + $0x298] sm:$0xff] }
 0x158   : > { %v1421_v9 = vld [vmem:[%s3955_s5 + $0x390] sm:$0xff]  ;;  %v1375_v31 = vld [vmem:[%s3955_s5 + $0x220] sm:$0xff]  ;;  %v1376_v32 = vld [vmem:[%s3955_s5 + $0x228] sm:$0xff] }
 0x159   : > { %2594 = vmatpush1.bf16.msra.mxu0 %v2593_v25  ;;  %2626 = vmatpush1.bf16.msra.mxu1 %v2625_v26  ;;  %v2677_v25 = vpack.c.bf16 %v1342_v19, %v1341_v18  ;;  %v1311_v26 = vld [vmem:[%s3955_s5 + $0x20] sm:$0xff]  ;;  %v1352_v18 = vld [vmem:[%s3955_s5 + $0x168] sm:$0xff] }
 0x15a   : > { %2596 = vmatprep.subr.bf16.mxu0 %v2595_v29  ;;  %2628 = vmatprep.subr.bf16.mxu1 %v2627_v30  ;;  %v2679_v29 = vpack.c.bf16 %v1360_v23, %v1359_v22  ;;  %v1344_v30 = vld [vmem:[%s3955_s5 + $0x128] sm:$0xff]  ;;  %v2649_v35 = vpack.c.bf16 %v1312_v27, %v1311_v26  ;;  %v1369_v22 = vld [vmem:[%s3955_s5 + $0x1f0] sm:$0xff]  ;;  %v2667_v23 = vpack.c.bf16 %v1338_v21, %v1337_v20  ;;  %v1322_v26 = vld [vmem:[%s3955_s5 + $0x78] sm:$0xff] }
 0x15b   : > { %v1406_v21 = vld [vmem:[%s3955_s5 + $0x318] sm:$0xff] }
 0x15d   : > { %2598 = vmatpush1.bf16.msra.mxu0 %v2597_v37  ;;  %2630 = vmatpush1.bf16.msra.mxu1 %v2629_v39  ;;  %v1313_v37 = vld [vmem:[%s3955_s5 + $0x30] sm:$0xff]  ;;  %v1314_v39 = vld [vmem:[%s3955_s5 + $0x38] sm:$0xff] }
 0x15e   : > { %2600 = vmatprep.subr.bf16.mxu0 %v2599_v42  ;;  %2632 = vmatprep.subr.bf16.mxu1 %v2631_v43  ;;  %v1345_v42 = vld [vmem:[%s3955_s5 + $0x130] sm:$0xff]  ;;  %v1346_v43 = vld [vmem:[%s3955_s5 + $0x138] sm:$0xff]  ;;  %v2653_v48 = vpack.c.bf16 %v1314_v39, %v1313_v37  ;;  %v943_v37 = vlaneseq }
 0x15f   : > { %v2685_v49 = vpack.c.bf16 %v1346_v43, %v1345_v42 }
 0x160   : > { %v3668_v39 = vshrl.u32 %v943_v37, 7  ;;  %v1393_v37 = vld [vmem:[%s3955_s5 + $0x2b0] sm:$0xff] }
 0x161   : > { %2602 = vmatpush1.bf16.msra.mxu0 %v2601_v50  ;;  %2634 = vmatpush1.bf16.msra.mxu1 %v2633_v51  ;;  %v2655_v50 = vpack.c.bf16 %v1332_v45, %v1331_v44  ;;  %v2687_v51 = vpack.c.bf16 %v1364_v47, %v1363_v46 }
 0x162   : > { %2604 = vmatprep.subr.bf16.mxu0 %v2603_v54  ;;  %2636 = vmatprep.subr.bf16.mxu1 %v2635_v56  ;;  %v1347_v54 = vld [vmem:[%s3955_s5 + $0x140] sm:$0xff]  ;;  %v2657_v56 = vpack.c.bf16 %v1316_v53, %v1315_v52  ;;  %v949_v42 = vsub.s32 1, %v3668_v39  ;;  %v957_v43 = vsub.s32 3, %v3668_v39  ;;  %v953_v44 = vsub.s32 2, %v3668_v39 }
 0x163   : > { %v2689_v58 = vpack.c.bf16 %v1348_v57, %v1347_v54 }
 0x165   : > { %2606 = vmatpush1.bf16.msra.mxu0 %v2605_v0  ;;  %2638 = vmatpush1.bf16.msra.mxu1 %v2637_v1  ;;  %v1366_v0 = vld [vmem:[%s3955_s5 + $0x1d8] sm:$0xff]  ;;  %v1317_v1 = vld [vmem:[%s3955_s5 + $0x50] sm:$0xff] }
 0x166   : > { %2640 = vmatprep.subr.bf16.mxu0 %v2639_v2  ;;  %2672 = vmatprep.subr.bf16.mxu1 %v2671_v3  ;;  %v1318_v2 = vld [vmem:[%s3955_s5 + $0x58] sm:$0xff]  ;;  %v2691_v3 = vpack.c.bf16 %v1366_v0, %v1365_v61 }
 0x167   : > { %v2661_v4 = vpack.c.bf16 %v1318_v2, %v1317_v1 }
 0x168   : > { %1202 = vmatmul.mubr.f32.vlgmr.msra.gmra.mrb[12].mxu0 %v3446_v38  ;;  %1279 = vmatmul.mubr.f32.vlgmr.msra.gmra.mrb[12].mxu1 %v3446_v38 }
 0x169   : > { %1207 = vmatprep.mubr.f32.mxu0 %v2919_v62  ;;  %1284 = vmatprep.mubr.f32.mxu1 %v2919_v62  ;;  %v1343_v62 = vld [vmem:[%s3955_s5 + $0x120] sm:$0xff] }
 0x16a   : > { %2642 = vmatpush3.bf16.msra.mxu0 %v2641_v12  ;;  %2674 = vmatpush3.bf16.msra.mxu1 %v2673_v13  ;;  %v2681_v36 = vpack.c.bf16 %v1344_v30, %v1343_v62  ;;  %v1368_v12 = vld [vmem:[%s3955_s5 + $0x1e8] sm:$0xff]  ;;  %v1319_v13 = vld [vmem:[%s3955_s5 + $0x60] sm:$0xff]  ;;  %v1354_v62 = vld [vmem:[%s3955_s5 + $0x178] sm:$0xff] }
 0x16b   : > { %2644 = vmatprep.subr.bf16.mxu0 %v2643_v16  ;;  %2676 = vmatprep.subr.bf16.mxu1 %v2675_v17  ;;  %v2695_v15 = vpack.c.bf16 %v1368_v12, %v1367_v10  ;;  %v2665_v16 = vpack.c.bf16 %v1320_v14, %v1319_v13  ;;  %v1351_v17 = vld [vmem:[%s3955_s5 + $0x160] sm:$0xff]  ;;  %v1422_v10 = vld [vmem:[%s3955_s5 + $0x398] sm:$0xff]  ;;  %v2737_v14 = vpack.c.bf16 %v1404_v6, %v1403_v5  ;;  %v1412_v6 = vld [vmem:[%s3955_s5 + $0x348] sm:$0xff] }
 0x16c   : > { %1208 = vmatmul.mubr.f32.gmra.mrb[14].mxu0 %v3450_v55  ;;  %1285 = vmatmul.mubr.f32.gmra.mrb[14].mxu1 %v3450_v55  ;;  %v2697_v19 = vpack.c.bf16 %v1352_v18, %v1351_v17  ;;  %v1374_v17 = vld [vmem:[%s3955_s5 + $0x218] sm:$0xff]  ;;  %v1405_v18 = vld [vmem:[%s3955_s5 + $0x310] sm:$0xff]  ;;  %v2739_v20 = vpack.c.bf16 %v1422_v10, %v1421_v9 }
 0x16d   : > { %v1429_v9 = vld [vmem:[%s3955_s5 + $0x3d0] sm:$0xff]  ;;  %v1430_v10 = vld [vmem:[%s3955_s5 + $0x3d8] sm:$0xff] }
 0x16e   : > { %2646 = vmatpush3.bf16.msra.mxu0 %v2645_v24  ;;  %2678 = vmatpush3.bf16.msra.mxu1 %v2677_v25  ;;  %v1370_v24 = vld [vmem:[%s3955_s5 + $0x1f8] sm:$0xff]  ;;  %v1321_v25 = vld [vmem:[%s3955_s5 + $0x70] sm:$0xff] }
 0x16f   : > { %2648 = vmatprep.subr.bf16.mxu0 %v2647_v28  ;;  %2680 = vmatprep.subr.bf16.mxu1 %v2679_v29  ;;  %v2699_v27 = vpack.c.bf16 %v1370_v24, %v1369_v22  ;;  %v2669_v28 = vpack.c.bf16 %v1322_v26, %v1321_v25  ;;  %v1353_v29 = vld [vmem:[%s3955_s5 + $0x170] sm:$0xff]  ;;  %v1391_v22 = vld [vmem:[%s3955_s5 + $0x2a0] sm:$0xff]  ;;  %v1424_v26 = vld [vmem:[%s3955_s5 + $0x3a8] sm:$0xff] }
 0x170   : > { %v2701_v30 = vpack.c.bf16 %v1354_v62, %v1353_v29  ;;  %v1423_v25 = vld [vmem:[%s3955_s5 + $0x3a0] sm:$0xff]  ;;  %v2741_v62 = vpack.c.bf16 %v1406_v21, %v1405_v18  ;;  %v1382_v18 = vld [vmem:[%s3955_s5 + $0x258] sm:$0xff] }
 0x172   : > { %2650 = vmatpush3.bf16.msra.mxu0 %v2649_v35  ;;  %2682 = vmatpush3.bf16.msra.mxu1 %v2681_v36  ;;  %v1420_v35 = vld [vmem:[%s3955_s5 + $0x388] sm:$0xff] }
 0x173   : > { %2652 = vmatprep.subr.bf16.mxu0 %v2651_v40  ;;  %2684 = vmatprep.subr.bf16.mxu1 %v2683_v41  ;;  %v2735_v36 = vpack.c.bf16 %v1420_v35, %v1419_v33  ;;  %v945_v40 = vsub.s32 0, %v3668_v39  ;;  %v3674_v41 = vld [vmem:[%s3954_s4] sm:$0xff]  ;;  %v2743_v35 = vpack.c.bf16 %v1424_v26, %v1423_v25 }
 0x174   : > { %v950_v46 = vrot.slane %v3674_v41, %v949_v42  ;;  %v958_v47 = vrot.slane %v3674_v41, %v957_v43  ;;  %v1407_v33 = vld [vmem:[%s3955_s5 + $0x320] sm:$0xff]  ;;  %v1425_v43 = vld [vmem:[%s3955_s5 + $0x3b0] sm:$0xff] }
 0x175   : > { %v946_v45 = vrot.slane %v3674_v41, %v945_v40  ;;  %v1394_v40 = vld [vmem:[%s3955_s5 + $0x2b8] sm:$0xff] }
 0x176   : > { %2654 = vmatpush3.bf16.msra.mxu0 %v2653_v48  ;;  %2686 = vmatpush3.bf16.msra.mxu1 %v2685_v49  ;;  %v954_v48 = vrot.slane %v3674_v41, %v953_v44  ;;  %v1426_v44 = vld [vmem:[%s3955_s5 + $0x3b8] sm:$0xff] }
 0x177   : > { %2656 = vmatprep.subr.bf16.mxu0 %v2655_v50  ;;  %2688 = vmatprep.subr.bf16.mxu1 %v2687_v51 }
 0x17a   : > { %2658 = vmatpush3.bf16.msra.mxu0 %v2657_v56  ;;  %2690 = vmatpush3.bf16.msra.mxu1 %v2689_v58 }
 0x17b   : > { %2660 = vmatprep.subr.bf16.mxu0 %v2659_v63  ;;  %2692 = vmatprep.subr.bf16.mxu1 %v2691_v3  ;;  %v1371_v3 = vld [vmem:[%s3955_s5 + $0x200] sm:$0xff] }
 0x17e   : > { %2662 = vmatpush3.bf16.msra.mxu0 %v2661_v4  ;;  %2694 = vmatpush3.bf16.msra.mxu1 %v2693_v7  ;;  %v1372_v4 = vld [vmem:[%s3955_s5 + $0x208] sm:$0xff]  ;;  %v1389_v7 = vld [vmem:[%s3955_s5 + $0x290] sm:$0xff] }
 0x17f   : > { %2664 = vmatprep.subr.bf16.mxu0 %v2663_v11  ;;  %2696 = vmatprep.subr.bf16.mxu1 %v2695_v15  ;;  %v2705_v12 = vpack.c.bf16 %v1372_v4, %v1371_v3  ;;  %v2707_v15 = vpack.c.bf16 %v1390_v8, %v1389_v7  ;;  %v1380_v3 = vld [vmem:[%s3955_s5 + $0x248] sm:$0xff]  ;;  %v1411_v4 = vld [vmem:[%s3955_s5 + $0x340] sm:$0xff]  ;;  %v1398_v7 = vld [vmem:[%s3955_s5 + $0x2d8] sm:$0xff] }
 0x182   : > { %2666 = vmatpush3.bf16.msra.mxu0 %v2665_v16  ;;  %2698 = vmatpush3.bf16.msra.mxu1 %v2697_v19  ;;  %v1373_v16 = vld [vmem:[%s3955_s5 + $0x210] sm:$0xff] }
 0x183   : > { %2668 = vmatprep.subr.bf16.mxu0 %v2667_v23  ;;  %2700 = vmatprep.subr.bf16.mxu1 %v2699_v27  ;;  %v1392_v23 = vld [vmem:[%s3955_s5 + $0x2a8] sm:$0xff] }
 0x186   : > { %2670 = vmatpush3.bf16.msra.mxu0 %v2669_v28  ;;  %2702 = vmatpush3.bf16.msra.mxu1 %v2701_v30  ;;  %v2709_v28 = vpack.c.bf16 %v1374_v17, %v1373_v16  ;;  %v2711_v30 = vpack.c.bf16 %v1392_v23, %v1391_v22  ;;  %v1381_v17 = vld [vmem:[%s3955_s5 + $0x250] sm:$0xff]  ;;  %v2755_v22 = vpack.c.bf16 %v1430_v10, %v1429_v9  ;;  %v1399_v23 = vld [vmem:[%s3955_s5 + $0x2e0] sm:$0xff] }
 0x187   : > { %2704 = vmatprep.subr.bf16.mxu0 %v2703_v34  ;;  %2736 = vmatprep.subr.bf16.mxu1 %v2735_v36  ;;  %v1408_v36 = vld [vmem:[%s3955_s5 + $0x328] sm:$0xff] }
 0x21b   : > { %v1049_v49 = vpop.f32.mrb[8].mxu0  ;;  %v1126_v50 = vpop.f32.mrb[8].mxu1 }
 0x21c   : > { %v1050_v51 = vadd.f32 %v1049_v49, %v946_v45  ;;  %v1051_v52 = vpop.f32.mrb[9].mxu0  ;;  %v1128_v53 = vpop.f32.mrb[9].mxu1  ;;  %v1127_v57 = vadd.f32 %v1126_v50, %v954_v48  ;;  %v1378_v49 = vld [vmem:[%s3955_s5 + $0x238] sm:$0xff]  ;;  %v1409_v50 = vld [vmem:[%s3955_s5 + $0x330] sm:$0xff] }
 0x21d   : > { %v1052_v54 = vadd.f32 %v1051_v52, %v950_v46  ;;  %v1129_v56 = vadd.f32 %v1128_v53, %v958_v47  ;;  %v1410_v52 = vld [vmem:[%s3955_s5 + $0x338] sm:$0xff]  ;;  %v1395_v53 = vld [vmem:[%s3955_s5 + $0x2c0] sm:$0xff] }
 0x21e   : > { %2836 = vtanh.f32 %v1050_v51  ;;  %v2747_v51 = vpack.c.bf16 %v1426_v44, %v1425_v43  ;;  %v1416_v44 = vld [vmem:[%s3955_s5 + $0x368] sm:$0xff] }
 0x21f   : > { %v1055_v58 = vpop.f32.mrb[10].mxu0  ;;  %v1132_v59 = vpop.f32.mrb[10].mxu1  ;;  %2838 = vtanh.f32 %v1052_v54  ;;  %v1396_v54 = vld [vmem:[%s3955_s5 + $0x2c8] sm:$0xff] }
 0x220   : > { %v1056_v60 = vadd.f32 %v1055_v58, %v946_v45  ;;  %v1057_v61 = vpop.f32.mrb[11].mxu0  ;;  %v1134_v63 = vpop.f32.mrb[11].mxu1  ;;  %2840 = vtanh.f32 %v1129_v56  ;;  %v1133_v2 = vadd.f32 %v1132_v59, %v954_v48  ;;  %v2713_v45 = vpack.c.bf16 %v1376_v32, %v1375_v31  ;;  %v1377_v48 = vld [vmem:[%s3955_s5 + $0x230] sm:$0xff]  ;;  %v1428_v58 = vld [vmem:[%s3955_s5 + $0x3c8] sm:$0xff] }
 0x221   : > { %v1058_v0 = vadd.f32 %v1057_v61, %v950_v46  ;;  %v1135_v1 = vadd.f32 %v1134_v63, %v958_v47  ;;  %2842 = vtanh.f32 %v1127_v57  ;;  %v2745_v46 = vpack.c.bf16 %v1408_v36, %v1407_v33  ;;  %v1427_v57 = vld [vmem:[%s3955_s5 + $0x3c0] sm:$0xff]  ;;  %v1384_v36 = vld [vmem:[%s3955_s5 + $0x268] sm:$0xff] }
 0x222   : > { %2844 = vtanh.f32 %v1056_v60  ;;  %v2715_v47 = vpack.c.bf16 %v1394_v40, %v1393_v37  ;;  %v961_v56 = vsub.s32 4, %v3668_v39  ;;  %v2717_v59 = vpack.c.bf16 %v1378_v49, %v1377_v48  ;;  %v1415_v37 = vld [vmem:[%s3955_s5 + $0x360] sm:$0xff] }
 0x223   : > { %2846 = vtanh.f32 %v1058_v0  ;;  %v965_v60 = vsub.s32 5, %v3668_v39  ;;  %v973_v61 = vsub.s32 7, %v3668_v39  ;;  %v2749_v63 = vpack.c.bf16 %v1410_v52, %v1409_v50  ;;  %v1433_v50 = vld [vmem:[%s3955_s5 + $0x3f0] sm:$0xff] }
 0x224   : > { %2848 = vtanh.f32 %v1135_v1  ;;  %v969_v0 = vsub.s32 6, %v3668_v39  ;;  %v2719_v1 = vpack.c.bf16 %v1396_v54, %v1395_v53  ;;  %v2751_v5 = vpack.c.bf16 %v1428_v58, %v1427_v57  ;;  %v1397_v39 = vld [vmem:[%s3955_s5 + $0x2d0] sm:$0xff] }
 0x225   : > { %2850 = vtanh.f32 %v1133_v2  ;;  %v1379_v2 = vld [vmem:[%s3955_s5 + $0x240] sm:$0xff]  ;;  %v962_v8 = vrot.slane %v3674_v41, %v961_v56  ;;  %v2723_v16 = vpack.c.bf16 %v1398_v7, %v1397_v39  ;;  %v2725_v31 = vpack.c.bf16 %v1382_v18, %v1381_v17  ;;  %v1768_v39 = vld [vmem:[%s3957_s7 + $0x18] sm:$0xff]  ;;  %v1771_v18 = vld [vmem:[%s3957_s7 + $0x30] sm:$0xff] }
 0x226   : > { %v2761_v57 = vpack.c.bf16 %v1416_v44, %v1415_v37 }
 0x228   : > { %v2837_v11 = vpop.eup %2836 }
 0x229   : > { %v2839_v13 = vpop.eup %2838 }
 0x22a   : > { %v2841_v19 = vpop.eup %2840  ;;  %1506 = vmatprep.mubr.f32.mxu0 %v2839_v13  ;;  %v2721_v13 = vpack.c.bf16 %v1380_v3, %v1379_v2  ;;  %v1766_v2 = vld [vmem:[%s3957_s7 + $0x8] sm:$0xff] }
 0x22b   : > { %v2843_v24 = vpop.eup %2842  ;;  %1581 = vmatprep.mubr.f32.mxu1 %v2841_v19  ;;  %1507 = vmatmul.mubr.f32.vlgmr.msra.gmra.mrb[16].mxu0 %v2837_v11  ;;  %v966_v11 = vrot.slane %v3674_v41, %v965_v60  ;;  %v1413_v19 = vld [vmem:[%s3955_s5 + $0x350] sm:$0xff]  ;;  %v1386_v60 = vld [vmem:[%s3955_s5 + $0x278] sm:$0xff] }
 0x22c   : > { %v2845_v27 = vpop.eup %2844  ;;  %1582 = vmatmul.mubr.f32.vlgmr.msra.gmra.mrb[16].mxu1 %v2843_v24  ;;  %2706 = vmatpush3.bf16.msra.mxu0 %v2705_v12  ;;  %v974_v12 = vrot.slane %v3674_v41, %v973_v61  ;;  %v1400_v24 = vld [vmem:[%s3955_s5 + $0x2e8] sm:$0xff]  ;;  %v1417_v61 = vld [vmem:[%s3955_s5 + $0x370] sm:$0xff] }
 0x22d   : > { %v2847_v29 = vpop.eup %2846  ;;  %2738 = vmatpush3.bf16.msra.mxu1 %v2737_v14  ;;  %2708 = vmatprep.subr.bf16.mxu0 %v2707_v15  ;;  %v970_v14 = vrot.slane %v3674_v41, %v969_v0  ;;  %v2753_v15 = vpack.c.bf16 %v1412_v6, %v1411_v4  ;;  %v1414_v41 = vld [vmem:[%s3955_s5 + $0x358] sm:$0xff]  ;;  %v1767_v6 = vld [vmem:[%s3957_s7 + $0x10] sm:$0xff] }
 0x22e   : > { %v2849_v34 = vpop.eup %2848  ;;  %1511 = vmatprep.mubr.f32.mxu0 %v2847_v29  ;;  %2740 = vmatprep.subr.bf16.mxu1 %v2739_v20  ;;  %v1432_v29 = vld [vmem:[%s3955_s5 + $0x3e8] sm:$0xff]  ;;  %v2757_v33 = vpack.c.bf16 %v1414_v41, %v1413_v19  ;;  %v1418_v0 = vld [vmem:[%s3955_s5 + $0x378] sm:$0xff]  ;;  %v2771_v9 = vpack.c.bf16 %v1768_v39, %v1767_v6 }
 0x22f   : > { %v2851_v42 = vpop.eup %2850  ;;  %1586 = vmatprep.mubr.f32.mxu1 %v2849_v34  ;;  %1512 = vmatmul.mubr.f32.gmra.mrb[18].mxu0 %v2845_v27  ;;  %v2727_v34 = vpack.c.bf16 %v1400_v24, %v1399_v23  ;;  %v2765_v4 = vpack.c.bf16 %v1418_v0, %v1417_v61  ;;  %v1772_v19 = vld [vmem:[%s3957_s7 + $0x38] sm:$0xff]  ;;  %v1774_v41 = vld [vmem:[%s3957_s7 + $0x48] sm:$0xff]  ;;  %v1775_v24 = vld [vmem:[%s3957_s7 + $0x50] sm:$0xff] }
 0x230   : > { %1587 = vmatmul.mubr.f32.gmra.mrb[18].mxu1 %v2851_v42  ;;  %2710 = vmatpush3.bf16.msra.mxu0 %v2709_v28  ;;  %v1431_v28 = vld [vmem:[%s3955_s5 + $0x3e0] sm:$0xff] }
 0x231   : > { %2742 = vmatpush3.bf16.msra.mxu1 %v2741_v62  ;;  %2712 = vmatprep.subr.bf16.mxu0 %v2711_v30  ;;  %v2759_v43 = vpack.c.bf16 %v1432_v29, %v1431_v28  ;;  %v1779_v29 = vld [vmem:[%s3957_s7 + $0x70] sm:$0xff] }
 0x232   : > { %2744 = vmatprep.subr.bf16.mxu1 %v2743_v35  ;;  %v1383_v35 = vld [vmem:[%s3955_s5 + $0x260] sm:$0xff] }
 0x233   : > { %v2729_v54 = vpack.c.bf16 %v1384_v36, %v1383_v35 }
 0x234   : > { %2714 = vmatpush3.bf16.msra.mxu0 %v2713_v45  ;;  %v1401_v45 = vld [vmem:[%s3955_s5 + $0x2f0] sm:$0xff] }
 0x235   : > { %2746 = vmatpush3.bf16.msra.mxu1 %v2745_v46  ;;  %2716 = vmatprep.subr.bf16.mxu0 %v2715_v47  ;;  %v1402_v46 = vld [vmem:[%s3955_s5 + $0x2f8] sm:$0xff] }
 0x236   : > { %2748 = vmatprep.subr.bf16.mxu1 %v2747_v51  ;;  %v1434_v51 = vld [vmem:[%s3955_s5 + $0x3f8] sm:$0xff]  ;;  %v2731_v58 = vpack.c.bf16 %v1402_v46, %v1401_v45 }
 0x238   : > { %2718 = vmatpush3.bf16.msra.mxu0 %v2717_v59  ;;  %v1385_v59 = vld [vmem:[%s3955_s5 + $0x270] sm:$0xff] }
 0x239   : > { %2750 = vmatpush3.bf16.msra.mxu1 %v2749_v63  ;;  %2720 = vmatprep.subr.bf16.mxu0 %v2719_v1  ;;  %v2763_v63 = vpack.c.bf16 %v1434_v51, %v1433_v50  ;;  %v1765_v1 = vld [vmem:[%s3957_s7] sm:$0xff]  ;;  %v2733_v3 = vpack.c.bf16 %v1386_v60, %v1385_v59 }
 0x23a   : > { %2752 = vmatprep.subr.bf16.mxu1 %v2751_v5  ;;  %v2767_v5 = vpack.c.bf16 %v1766_v2, %v1765_v1 }
 0x23b   : > { %v1203_v20 = vpop.f32.mrb[12].mxu0  ;;  %v1280_v21 = vpop.f32.mrb[12].mxu1 }
 0x23c   : > { %v1204_v25 = vadd.f32 %v1203_v20, %v962_v8  ;;  %v1205_v26 = vpop.f32.mrb[13].mxu0  ;;  %v1282_v27 = vpop.f32.mrb[13].mxu1  ;;  %2722 = vmatpush3.bf16.msra.mxu0 %v2721_v13  ;;  %v1281_v32 = vadd.f32 %v1280_v21, %v970_v14  ;;  %v2779_v21 = vpack.c.bf16 %v1772_v19, %v1771_v18  ;;  %v2921_v18 = vmov 1  }
 0x23d   : > { %v1206_v62 = vadd.f32 %v1205_v26, %v966_v11  ;;  %v1283_v30 = vadd.f32 %v1282_v27, %v974_v12  ;;  %2754 = vmatpush3.bf16.msra.mxu1 %v2753_v15  ;;  %2724 = vmatprep.subr.bf16.mxu0 %v2723_v16  ;;  %v1777_v26 = vld [vmem:[%s3957_s7 + $0x60] sm:$0xff]  ;;  %v1778_v27 = vld [vmem:[%s3957_s7 + $0x68] sm:$0xff] }
 0x23e   : > { %2852 = vtanh.f32 %v1204_v25  ;;  %2756 = vmatprep.subr.bf16.mxu1 %v2755_v22  ;;  %v1773_v22 = vld [vmem:[%s3957_s7 + $0x40] sm:$0xff]  ;;  %v2791_v28 = vpack.c.bf16 %v1778_v27, %v1777_v26  ;;  %2828 = vset.pattern.permute.xlu0 %v2921_v18 }
 0x23f   : > { %v1209_v40 = vpop.f32.mrb[14].mxu0  ;;  %v1286_v42 = vpop.f32.mrb[14].mxu1  ;;  %2854 = vtanh.f32 %v1206_v62  ;;  %v2783_v23 = vpack.c.bf16 %v1774_v41, %v1773_v22  ;;  %v1780_v62 = vld [vmem:[%s3957_s7 + $0x78] sm:$0xff]  ;;  %v2922_v41 = vmov 3  }
 0x240   : > { %v1210_v47 = vadd.f32 %v1209_v40, %v962_v8  ;;  %v1211_v48 = vpop.f32.mrb[15].mxu0  ;;  %v1288_v49 = vpop.f32.mrb[15].mxu1  ;;  %2856 = vtanh.f32 %v1283_v30  ;;  %2726 = vmatpush3.bf16.msra.mxu0 %v2725_v31  ;;  %v1287_v56 = vadd.f32 %v1286_v42, %v970_v14  ;;  %v2795_v30 = vpack.c.bf16 %v1780_v62, %v1779_v29 }
 0x241   : > { %v1212_v52 = vadd.f32 %v1211_v48, %v966_v11  ;;  %v1289_v53 = vadd.f32 %v1288_v49, %v974_v12  ;;  %2858 = vtanh.f32 %v1281_v32  ;;  %2758 = vmatpush3.bf16.msra.mxu1 %v2757_v33  ;;  %2728 = vmatprep.subr.bf16.mxu0 %v2727_v34  ;;  %v1769_v11 = vld [vmem:[%s3957_s7 + $0x20] sm:$0xff]  ;;  %v1770_v12 = vld [vmem:[%s3957_s7 + $0x28] sm:$0xff] }
 0x242   : > { %2860 = vtanh.f32 %v1210_v47  ;;  %2760 = vmatprep.subr.bf16.mxu1 %v2759_v43  ;;  %v2775_v16 = vpack.c.bf16 %v1770_v12, %v1769_v11  ;;  %v2021_v33 = vld [vmem:[%s3956_s6] ss:$0 sm:$0xff] }
 0x243   : > { %2862 = vtanh.f32 %v1212_v52 }
 0x244   : > { %2864 = vtanh.f32 %v1289_v53  ;;  %2730 = vmatpush3.bf16.msra.mxu0 %v2729_v54 }
 0x245   : > { %2866 = vtanh.f32 %v1287_v56  ;;  %2762 = vmatpush3.bf16.msra.mxu1 %v2761_v57  ;;  %2732 = vmatprep.subr.bf16.mxu0 %v2731_v58 }
 0x246   : > { %2764 = vmatprep.subr.bf16.mxu1 %v2763_v63 }
 0x248   : > { %v2853_v7 = vpop.eup %2852  ;;  %2734 = vmatpush3.bf16.msra.mxu0 %v2733_v3 }
 0x249   : > { %v2855_v8 = vpop.eup %2854  ;;  %2766 = vmatpush3.bf16.msra.mxu1 %v2765_v4  ;;  %2768 = vmatprep.subr.bf16.mxu0 %v2767_v5 }
 0x24a   : > { %v2857_v10 = vpop.eup %2856  ;;  %1656 = vmatprep.mubr.f32.mxu0 %v2855_v8 }
 0x24b   : > { %v2859_v13 = vpop.eup %2858  ;;  %1731 = vmatprep.mubr.f32.mxu1 %v2857_v10  ;;  %1657 = vmatmul.mubr.f32.vlgmr.msra.gmra.mrb[20].mxu0 %v2853_v7 }
 0x24c   : > { %v2861_v14 = vpop.eup %2860  ;;  %1732 = vmatmul.mubr.f32.vlgmr.msra.gmra.mrb[20].mxu1 %v2859_v13  ;;  %2770 = vmatpush3.bf16.msra.mxu0 %v2767_v5 }
 0x24d   : > { %v2863_v15 = vpop.eup %2862  ;;  %2772 = vmatprep.subr.bf16.mxu0 %v2771_v9 }
 0x24e   : > { %v2865_v17 = vpop.eup %2864  ;;  %1661 = vmatprep.mubr.f32.mxu0 %v2863_v15 }
 0x24f   : > { %v2867_v20 = vpop.eup %2866  ;;  %1736 = vmatprep.mubr.f32.mxu1 %v2865_v17  ;;  %1662 = vmatmul.mubr.f32.gmra.mrb[22].mxu0 %v2861_v14  ;;  %v2920_v17 = vmov 2  }
 0x250   : > { %1737 = vmatmul.mubr.f32.gmra.mrb[22].mxu1 %v2867_v20  ;;  %2774 = vmatpush3.bf16.msra.mxu0 %v2771_v9 }
 0x251   : > { %2380 = vmatprep.mubr.f32.mxu0 %v3446_v38  ;;  %2776 = vmatprep.subr.bf16.mxu0 %v2775_v16  ;;  %v1776_v38 = vld [vmem:[%s3957_s7 + $0x58] sm:$0xff] }
 0x252   : > { %v2787_v25 = vpack.c.bf16 %v1776_v38, %v1775_v24  ;;  %2829 = vset.pattern.permute.xlu1 %v2920_v17  ;;  %v2923_v38 = vmov 0  }
 0x254   : > { %2778 = vmatpush3.bf16.msra.mxu0 %v2775_v16 }
 0x255   : > { %2780 = vmatprep.subr.bf16.mxu0 %v2779_v21 }
 0x258   : > { %2782 = vmatpush3.bf16.msra.mxu0 %v2779_v21 }
 0x259   : > { %2784 = vmatprep.subr.bf16.mxu0 %v2783_v23 }
 0x25c   : > { %2786 = vmatpush3.bf16.msra.mxu0 %v2783_v23 }
 0x25d   : > { %2788 = vmatprep.subr.bf16.mxu0 %v2787_v25 }
 0x260   : > { %2790 = vmatpush3.bf16.msra.mxu0 %v2787_v25 }
 0x261   : > { %2792 = vmatprep.subr.bf16.mxu0 %v2791_v28 }
 0x264   : > { %2794 = vmatpush3.bf16.msra.mxu0 %v2791_v28 }
 0x265   : > { %2796 = vmatprep.subr.bf16.mxu0 %v2795_v30 }
 0x268   : > { %2798 = vmatpush3.bf16.msra.mxu0 %v2795_v30 }
 0x26b   : > { %2381 = vmatmul.mubr.f32.vlgmr.msra.gmra.mrb[24].mxu0 %v3450_v55 }
 0x2fe   : > { %v2210_v31 = vpop.f32.mrb[16].mxu0 }
 0x2ff   : > { %v2248_v32 = vpop.f32.mrb[16].mxu1  ;;  %v2211_v34 = vpop.f32.mrb[17].mxu0 }
 0x300   : > { %v2212_v35 = vadd.f32 %v2211_v34, %v2210_v31  ;;  %v2249_v36 = vpop.f32.mrb[17].mxu1 }
 0x301   : > { %v2250_v37 = vadd.f32 %v2249_v36, %v2248_v32 }
 0x302   : > { %v1509_v40 = vadd.f32 %v2212_v35, %v2021_v33  ;;  %v2213_v42 = vpop.f32.mrb[18].mxu0 }
 0x303   : > { %v2251_v43 = vpop.f32.mrb[18].mxu1  ;;  %v2214_v44 = vpop.f32.mrb[19].mxu0 }
 0x304   : > { %v1584_v45 = vadd.f32 %v2250_v37, %v1509_v40  ;;  %v2215_v46 = vadd.f32 %v2214_v44, %v2213_v42  ;;  %v2252_v47 = vpop.f32.mrb[19].mxu1 }
 0x305   : > { %v2253_v48 = vadd.f32 %v2252_v47, %v2251_v43 }
 0x306   : > { %v1514_v49 = vadd.f32 %v2215_v46, %v2021_v33  ;;  %v2022_v46 = vld [vmem:[%s3958_s8] ss:$0 sm:$0xff] }
 0x308   : > { %v1589_v55 = vadd.f32 %v2253_v48, %v1514_v49 }
 0x31e   : > { %v2286_v50 = vpop.f32.mrb[20].mxu0 }
 0x31f   : > { %v2324_v51 = vpop.f32.mrb[20].mxu1  ;;  %v2287_v52 = vpop.f32.mrb[21].mxu0 }
 0x320   : > { %v2288_v53 = vadd.f32 %v2287_v52, %v2286_v50  ;;  %v2325_v54 = vpop.f32.mrb[21].mxu1 }
 0x321   : > { %v2326_v56 = vadd.f32 %v2325_v54, %v2324_v51 }
 0x322   : > { %v1659_v57 = vadd.f32 %v2288_v53, %v1584_v45  ;;  %v2289_v58 = vpop.f32.mrb[22].mxu0 }
 0x323   : > { %v2327_v59 = vpop.f32.mrb[22].mxu1  ;;  %v2290_v60 = vpop.f32.mrb[23].mxu0 }
 0x324   : > { %v2291_v61 = vadd.f32 %v2290_v60, %v2289_v58  ;;  %v2328_v63 = vpop.f32.mrb[23].mxu1  ;;  %v1734_v0 = vadd.f32 %v2326_v56, %v1659_v57 }
 0x325   : > { %v2329_v1 = vadd.f32 %v2328_v63, %v2327_v59 }
 0x326   : > { %v1664_v2 = vadd.f32 %v2291_v61, %v1589_v55  ;;  %v1743_v3 = vsel %vm1742_vm0, %v1734_v0, -inf }
 0x327   : > { %1744 = vmax.xlane.f32.xlu0 %v1743_v3 }
 0x328   : > { %v1739_v4 = vadd.f32 %v2329_v1, %v1664_v2 }
 0x32a   : > { %v1746_v5 = vsel %vm1742_vm0, %v1739_v4, -inf }
 0x32b   : > { %1747 = vmax.xlane.f32.xlu0 %v1746_v5 }
 0x33e   : > { %v3926_v6 = vpop.f32.mrb[24].mxu0 }
 0x33f   : > { %v3928_v39 = vpop.f32.mrb[25].mxu0 }
 0x3b4   : > { %v1745_v7 = vpop.xlane.xlu0 %1744 }
 0x3b5   : > { %v1749_v8 = vsub.f32 %v1734_v0, %v1745_v7 }
 0x3b7   : > { %v1751_v9 = vmul.f32 1.442695, %v1749_v8 }
 0x3b8   : > { %v1748_v10 = vpop.xlane.xlu0 %1747 }
 0x3b9   : > { %2868 = vpow2.f32 %v1751_v9  ;;  %v1750_v11 = vsub.f32 %v1739_v4, %v1748_v10 }
 0x3bb   : > { %v1753_v12 = vmul.f32 1.442695, %v1750_v11 }
 0x3bd   : > { %2870 = vpow2.f32 %v1753_v12 }
 0x3c3   : > { %v2869_v13 = vpop.eup %2868 }
 0x3c4   : > { %v1755_v14 = vsel %vm1742_vm0, %v2869_v13, 0.0 }
 0x3c5   : > { %1756 = vadd.xlane.f32.xlu1 %v1755_v14 }
 0x3c7   : > { %v2871_v15 = vpop.eup %2870 }
 0x3c8   : > { %v1758_v16 = vsel %vm1742_vm0, %v2871_v15, 0.0 }
 0x3c9   : > { %1759 = vadd.xlane.f32.xlu1 %v1758_v16 }
 0x452   : > { %v1757_v19 = vpop.xlane.xlu1 %1756 }
 0x453   : > { %2872 = vrcp.f32 %v1757_v19 }
 0x456   : > { %v1760_v20 = vpop.xlane.xlu1 %1759 }
 0x457   : > { %2874 = vrcp.f32 %v1760_v20 }
 0x45d   : > { %v2873_v21 = vpop.eup %2872 }
 0x45e   : > { %v1762_v22 = vmul.f32 %v2873_v21, %v2869_v13 }
 0x460   : > { %1869 = vperm.xlu0 %2828, %v1762_v22   ;;  %1889 = vperm.xlu1 %2829, %v1762_v22  }
 0x461   : > { %v2875_v23 = vpop.eup %2874 }
 0x462   : > { %v1764_v24 = vmul.f32 %v2875_v23, %v2871_v15 }
 0x464   : > { %2830 = vset.pattern.permute.xlu1 %v2922_v41  ;;  %2835 = vset.pattern.permute.xlu0 %v2922_v41 }
 0x465   : > { %1909 = vperm.xlu1 %2830, %v1762_v22  }
 0x469   : > { %2831 = vset.pattern.permute.xlu1 %v2921_v18 }
 0x46a   : > { %1873 = vperm.xlu1 %2831, %v1764_v24  }
 0x46e   : > { %2832 = vset.pattern.permute.xlu1 %v2920_v17 }
 0x46f   : > { %1893 = vperm.xlu1 %2832, %v1764_v24  }
 0x473   : > { %2833 = vset.pattern.permute.xlu1 %v2922_v41 }
 0x474   : > { %1913 = vperm.xlu1 %2833, %v1764_v24  }
 0x478   : > { %2834 = vset.pattern.permute.xlu1 %v2923_v38 }
 0x479   : > { %1858 = vperm.xlu1 %2834, %v1762_v22  }
 0x47d   : > { %1863 = vperm.xlu1 %2834, %v1764_v24  }
 0x4df   : > { %v1890_v25 = vpop.permute.xlu1 %1889  ;;  %v1870_v26 = vpop.permute.xlu0 %1869 }
 0x4e0   : > { %v1876_v27 = vmul.f32 %v1870_v26, %v3928_v39  ;;  %v1896_v28 = vmul.f32 %v1890_v25, %v3928_v39 }
 0x4e2   : > { %1880 = vrot.lane.b32.xlu1 %v1876_v27, %s2924_s21 }
 0x4e4   : > { %v1910_v29 = vpop.permute.xlu1 %1909 }
 0x4e5   : > { %v1916_v62 = vmul.f32 %v1910_v29, %v3928_v39 }
 0x4e6   : > { %1900 = vrot.lane.b32.xlu1 %v1896_v28, %s2925_s23 }
 0x4e9   : > { %v1874_v30 = vpop.permute.xlu1 %1873 }
 0x4ea   : > { %v1877_v31 = vmul.f32 %v3926_v6, %v1874_v30  ;;  %1920 = vrot.lane.b32.xlu1 %v1916_v62, %s2926_s24 }
 0x4ec   : > { %1882 = vrot.lane.b32.xlu0 %v1877_v31, %s2924_s21 }
 0x4ee   : > { %v1894_v32 = vpop.permute.xlu1 %1893 }
 0x4ef   : > { %v1897_v33 = vmul.f32 %v3926_v6, %v1894_v32 }
 0x4f1   : > { %1902 = vrot.lane.b32.xlu0 %v1897_v33, %s2925_s23 }
 0x4f3   : > { %v1914_v34 = vpop.permute.xlu1 %1913 }
 0x4f4   : > { %v1917_v35 = vmul.f32 %v3926_v6, %v1914_v34 }
 0x4f6   : > { %1922 = vrot.lane.b32.xlu0 %v1917_v35, %s2926_s24 }
 0x4f8   : > { %v1859_v36 = vpop.permute.xlu1 %1858 }
 0x4f9   : > { %v1866_v42 = vmul.f32 %v1859_v36, %v3928_v39 }
 0x4fc   : > { %v1864_v37 = vpop.permute.xlu1 %1863 }
 0x4fd   : > { %v1867_v50 = vmul.f32 %v3926_v6, %v1864_v37 }
 0x554   : > { %v1881_v40 = vpop.permute.xlu1 %1880 }
 0x555   : > { %v1886_v44 = vadd.f32 %v1881_v40, %v1866_v42 }
 0x558   : > { %v1901_v43 = vpop.permute.xlu1 %1900 }
 0x559   : > { %v1906_v45 = vadd.f32 %v1901_v43, %v1886_v44 }
 0x55c   : > { %v1921_v47 = vpop.permute.xlu1 %1920 }
 0x55d   : > { %v1926_v48 = vadd.f32 %v1921_v47, %v1906_v45 }
 0x55e   : > { %v1883_v49 = vpop.permute.xlu0 %1882 }
 0x55f   : > { %v1935_v55 = vadd.f32 %v2022_v46, %v1926_v48  ;;  %v1887_v52 = vadd.f32 %v1883_v49, %v1867_v50 }
 0x561   : > { %1938 = vst.msk [vmem:[%s352_s28] sm:$0xff] %vm1937_vm1, %v1935_v55 }
 0x563   : > { %v1903_v51 = vpop.permute.xlu0 %1902 }
 0x564   : > { %v1907_v53 = vadd.f32 %v1903_v51, %v1887_v52 }
 0x568   : > { %v1923_v54 = vpop.permute.xlu0 %1922 }
 0x569   : > { %v1927_v56 = vadd.f32 %v1923_v54, %v1907_v53 }
 0x56b   : > { %v1936_v57 = vadd.f32 %v2022_v46, %v1927_v56 }
 0x56d   : > { %1939 = vst.msk [vmem:[%s352_s28 + $0x8] sm:$0xff] %vm1937_vm1, %v1936_v57 }
 0x56e PF: > { %s20_s30 = sadd.s32 1, %s2914_s30  }
 0x56f   : > { %p17_p3 = scmp.ge.s32.totalorder %s20_s30, 4  }
 0x571   :  { %19 = sbr.rel (!%p17_p3) target bundleno = 1 (0x1), region = 91 }
 0x578   :  { %1962 = vsyncpa [#allocation3], 1 }
 0x579   :  { %1964 = vsyncpa [#allocation3 + $0x1], 1 }

</bundles_post_ra>
